<compile_context>
chip_gen: v6e
topology: v6e:2x2x1
jax: 0.10.0
libtpu: 0.0.40
codegen_flags: <defaults>
</compile_context>

<pallas_src>
import jax
import jax.numpy as jnp
from jax import lax
from jax.experimental import pallas as pl
from jax.experimental.pallas import tpu as pltpu


# ----------------------------------------------------------------------------
# Fused basic-block kernel (one grid step == nb batch elements).
# ----------------------------------------------------------------------------
def _make_block_kernel(stride, nb, Ho, Wo, Cin, planes, has_proj):
    s = stride
    HoWo = Ho * Wo
    M = nb * HoWo
    K2 = 9 * planes + (Cin if has_proj else 0)
    # 3x3 taps -> (tap index, parity plane, row offset, col offset) into the
    # parity-decomposed padded input; every slice is contiguous (stride-1).
    taps = [(ky * 3 + kx, (ky % s) * s + (kx % s), ky // s, kx // s)
            for ky in range(3) for kx in range(3)]
    _, c_par, c_r0, c_c0 = taps[4]          # center tap (ky = kx = 1)

    def kernel(xp_ref, w1_ref, b1_ref, w2_ref, b2_ref, o_ref,
               col1_ref, out1p_ref, col2_ref):
        # ---- im2col for conv1: 9 contiguous window slices -> bf16 scratch ----
        for j in range(nb):
            r = j * HoWo
            for t, par, r0, c0 in taps:
                v = xp_ref[j * s * s + par, r0:r0 + Ho, c0:c0 + Wo, :]
                col1_ref[r:r + HoWo, t * Cin:(t + 1) * Cin] = v.reshape(HoWo, Cin)

        # ---- conv1 (3x3, stride s, bn1 folded) + relu: ONE GEMM, K = 9*Cin ----
        out1 = jnp.dot(col1_ref[...], w1_ref[...],
                       preferred_element_type=jnp.float32)
        out1 = jnp.maximum(out1 + b1_ref[...], 0.0).astype(jnp.bfloat16)

        # Keep out1 resident in VMEM with a zero halo for conv2 (no HBM round
        # trip).  Only the halo strips are re-zeroed; the interior is always
        # overwritten, so no full-buffer zero pass per step.
        zrow = jnp.zeros((nb, 1, Wo + 2, planes), jnp.bfloat16)
        zcol = jnp.zeros((nb, Ho + 2, 1, planes), jnp.bfloat16)
        out1p_ref[:, 0:1, :, :] = zrow
        out1p_ref[:, Ho + 1:Ho + 2, :, :] = zrow
        out1p_ref[:, :, 0:1, :] = zcol
        out1p_ref[:, :, Wo + 1:Wo + 2, :] = zcol
        out1p_ref[:, 1:1 + Ho, 1:1 + Wo, :] = out1.reshape(nb, Ho, Wo, planes)

        # ---- im2col for conv2 (3x3, stride 1) + shortcut operand ----
        for j in range(nb):
            r = j * HoWo
            for ky in range(3):
                for kx in range(3):
                    t = ky * 3 + kx
                    v = out1p_ref[j, ky:ky + Ho, kx:kx + Wo, :]
                    col2_ref[r:r + HoWo, t * planes:(t + 1) * planes] = (
                        v.reshape(HoWo, planes))
            if has_proj:
                # 1x1(+bn) projection shortcut rides conv2's K dimension.
                xc = xp_ref[j * s * s + c_par, c_r0:c_r0 + Ho, c_c0:c_c0 + Wo, :]
                col2_ref[r:r + HoWo, 9 * planes:K2] = xc.reshape(HoWo, Cin)

        # ---- conv2 (+ proj shortcut): ONE GEMM, K = 9*planes (+ Cin) ----
        res = jnp.dot(col2_ref[...], w2_ref[...],
                      preferred_element_type=jnp.float32) + b2_ref[...]
        if not has_proj:
            # identity shortcut (stride 1): center tap of the resident input.
            xc = xp_ref[:, 1:1 + Ho, 1:1 + Wo, :]
            res = res + xc.reshape(M, Cin).astype(jnp.float32)
        o_ref[...] = jnp.maximum(res, 0.0).astype(o_ref.dtype)

    return kernel


# ----------------------------------------------------------------------------
# BatchNorm folding (inference mode, running stats) and the block wrapper.
# ----------------------------------------------------------------------------
def fold_bn(bn_params, eps=1e-5):
    gamma, beta, mean, var = bn_params
    scale = gamma / jnp.sqrt(var + eps)
    bias = beta - mean * scale
    return scale, bias


def basic_block_forward(x_nchw, params, stride, *, nb=1, out_dtype=jnp.float32):
    """Fused BasicBlock: relu(bn2(conv2(relu(bn1(conv1(x))))) + shortcut(x)).

    nb: batch elements folded into one grid step (stacked into the GEMM M dim).
    out_dtype: set to jnp.bfloat16 to halve writeback bytes when chaining blocks.
    """
    N, Cin, H, W = x_nchw.shape
    planes = params["w1"].shape[0]
    s = stride
    assert H % s == 0 and W % s == 0 and (W // s) % 8 == 0, "CIFAR-style maps only"
    assert N % nb == 0
    Ho, Wo = H // s, W // s
    HoWo = Ho * Wo
    has_proj = (s != 1) or (Cin != planes)

    # NCHW -> NHWC, zero-pad spatial by 1 (cheap XLA layout plumbing, 1x data).
    x = jnp.transpose(x_nchw, (0, 2, 3, 1))
    xp = jnp.pad(x, ((0, 0), (1, 1), (1, 1), (0, 0)))
    # Parity (space-to-batch) split so every in-kernel 3x3 tap slice is a
    # contiguous stride-1 window even when the conv stride is 2:
    #   x_proc[n*s*s + p*s+q, a, b, c] == xp[n, a*s+p, b*s+q, c]
    subs = [xp[:, p::s, q::s, :] for p in range(s) for q in range(s)]
    Hp, Wp = subs[0].shape[1], subs[0].shape[2]
    x_proc = jnp.stack(subs, axis=1).reshape(N * s * s, Hp, Wp, Cin)
    x_proc = x_proc.astype(jnp.bfloat16)     # cast activations at HBM boundary

    # Fold BN (inference) scale into the conv weights; reshape for single-GEMM
    # im2col: row index of w1 is t*Cin + c with t = ky*3 + kx.
    s1, b1 = fold_bn(params["bn1"])
    s2, b2 = fold_bn(params["bn2"])
    w1 = (jnp.transpose(params["w1"], (2, 3, 1, 0)) * s1).reshape(9 * Cin, planes)
    w2 = (jnp.transpose(params["w2"], (2, 3, 1, 0)) * s2).reshape(9 * planes, planes)
    if has_proj:
        ssc, bsc = fold_bn(params["bn_sc"])
        wsc = jnp.transpose(params["w_sc"][:, :, 0, 0], (1, 0)) * ssc   # (Cin, planes)
        w2 = jnp.concatenate([w2, wsc], axis=0)   # shortcut folded into conv2 GEMM
        b2 = b2 + bsc
    K2 = w2.shape[0]

    G = N // nb
    sc_flops = 2 * N * HoWo * Cin * planes if has_proj else 0
    flops = 2 * N * HoWo * 9 * planes * (Cin + planes) + sc_flops
    out_itemsize = 2 if out_dtype == jnp.bfloat16 else 4
    bytes_accessed = (x_proc.size * 2 + N * HoWo * planes * out_itemsize
                      + 2 * (w1.size + w2.size) + 8 * planes)

    out = pl.pallas_call(
        _make_block_kernel(s, nb, Ho, Wo, Cin, planes, has_proj),
        out_shape=jax.ShapeDtypeStruct((N * HoWo, planes), out_dtype),
        grid=(G,),
        in_specs=[
            pl.BlockSpec((nb * s * s, Hp, Wp, Cin), lambda n: (n, 0, 0, 0)),
            # grid-invariant (constant index map) weights / biases
            pl.BlockSpec((9 * Cin, planes), lambda n: (0, 0)),
            pl.BlockSpec((1, planes), lambda n: (0, 0)),
            pl.BlockSpec((K2, planes), lambda n: (0, 0)),
            pl.BlockSpec((1, planes), lambda n: (0, 0)),
        ],
        out_specs=pl.BlockSpec((nb * HoWo, planes), lambda n: (n, 0)),
        scratch_shapes=[
            pltpu.VMEM((nb * HoWo, 9 * Cin), jnp.bfloat16),          # conv1 im2col
            pltpu.VMEM((nb, Ho + 2, Wo + 2, planes), jnp.bfloat16),  # padded out1
            pltpu.VMEM((nb * HoWo, K2), jnp.bfloat16),               # conv2 im2col
        ],
        compiler_params=pltpu.CompilerParams(
            dimension_semantics=("parallel",)),   # batch axis -> v7x's 2 TCs
        cost_estimate=pl.CostEstimate(flops=int(flops), transcendentals=0,
                                      bytes_accessed=int(bytes_accessed)),
    )(x_proc, w1.astype(jnp.bfloat16), b1.reshape(1, planes),
      w2.astype(jnp.bfloat16), b2.reshape(1, planes))

    out = out.reshape(N, Ho, Wo, planes)
    return jnp.transpose(out, (0, 3, 1, 2))   # back to NCHW


# ----------------------------------------------------------------------------
# Pure-XLA references for correctness checking.
# ----------------------------------------------------------------------------
def ref_forward(x_nchw, params, stride, quantized=False):
    """Reference block forward.  quantized=True rounds conv operands AND the
    identity-shortcut activations to bf16 exactly like the kernel (which reads
    bf16 activations); quantized=False is the pure-f32 module semantics."""
    x = jnp.transpose(x_nchw, (0, 2, 3, 1))
    Cin, planes = x.shape[-1], params["w1"].shape[0]

    def q(a):
        return a.astype(jnp.bfloat16).astype(jnp.float32) if quantized else a

    def conv(inp, w_hwio, s, pad):
        return lax.conv_general_dilated(
            q(inp), q(w_hwio), (s, s), pad,
            dimension_numbers=("NHWC", "HWIO", "NHWC"),
            precision=lax.Precision.HIGHEST)

    s1, b1 = fold_bn(params["bn1"])
    s2, b2 = fold_bn(params["bn2"])
    w1 = jnp.transpose(params["w1"], (2, 3, 1, 0)) * s1
    w2 = jnp.transpose(params["w2"], (2, 3, 1, 0)) * s2
    out1 = jax.nn.relu(conv(x, w1, stride, ((1, 1), (1, 1))) + b1)
    out2 = conv(out1, w2, 1, ((1, 1), (1, 1))) + b2
    if stride != 1 or Cin != planes:
        ssc, bsc = fold_bn(params["bn_sc"])
        wsc = jnp.transpose(params["w_sc"], (2, 3, 1, 0)) * ssc
        sc = conv(x, wsc, stride, ((0, 0), (0, 0))) + bsc
    else:
        sc = q(x)   # kernel reads bf16 activations on the identity path
    out = jax.nn.relu(out2 + sc)
    return jnp.transpose(out, (0, 3, 1, 2))


# ----------------------------------------------------------------------------
# Deterministic parameter construction.
# ----------------------------------------------------------------------------
def make_params(key, in_planes, planes, stride):
    ks = jax.random.split(key, 8)

    def bn_init(k, c):
        k1, k2, k3, k4 = jax.random.split(k, 4)
        gamma = 1.0 + 0.1 * jax.random.normal(k1, (c,), jnp.float32)
        beta = 0.1 * jax.random.normal(k2, (c,), jnp.float32)
        mean = 0.1 * jax.random.normal(k3, (c,), jnp.float32)
        var = 1.0 + 0.1 * jax.random.uniform(k4, (c,), jnp.float32)
        return (gamma, beta, mean, var)

    params = {
        "w1": 0.1 * jax.random.normal(ks[0], (planes, in_planes, 3, 3), jnp.float32),
        "bn1": bn_init(ks[1], planes),
        "w2": 0.1 * jax.random.normal(ks[2], (planes, planes, 3, 3), jnp.float32),
        "bn2": bn_init(ks[3], planes),
    }
    if stride != 1 or in_planes != planes:
        params["w_sc"] = 0.1 * jax.random.normal(
            ks[4], (planes, in_planes, 1, 1), jnp.float32
        )
        params["bn_sc"] = bn_init(ks[5], planes)
    return params


def _check(out, ref_q, ref_f32, shape):
    assert out.shape == shape, out.shape
    # Tight structural check vs. a reference that applies the same bf16
    # rounding as the kernel; loose semantic check vs. the pure-f32 module.
    assert jnp.allclose(out, ref_q, atol=3e-2, rtol=3e-2), \
        float(jnp.abs(out - ref_q).max())
    assert jnp.allclose(out, ref_f32, atol=5e-2, rtol=5e-2), \
        float(jnp.abs(out - ref_f32).max())


if __name__ == "__main__":
    key = jax.random.PRNGKey(0)
    k_x, k_p1, k_p2 = jax.random.split(key, 3)

    # Case 1: projection shortcut (stride=2, channel expansion 4 -> 16),
    # one batch element per grid step (grid=(2,): both v7x TCs get work).
    in_planes, planes, stride = 4, 16, 2
    x = jax.random.normal(k_x, (2, in_planes, 16, 16), jnp.float32)
    params = make_params(k_p1, in_planes, planes, stride)
    out = jax.block_until_ready(basic_block_forward(x, params, stride, nb=1))
    _check(out,
           ref_forward(x, params, stride, quantized=True),
           ref_forward(x, params, stride, quantized=False),
           (2, planes, 8, 8))

    # Case 2: identity shortcut (stride=1, in_planes == planes), 2 batch
    # elements folded into one grid step (exercises the nb > 1 path).
    in_planes2, planes2, stride2 = 16, 16, 1
    x2 = jax.random.normal(k_x, (2, in_planes2, 16, 16), jnp.float32)
    params2 = make_params(k_p2, in_planes2, planes2, stride2)
    out2 = jax.block_until_ready(basic_block_forward(x2, params2, stride2, nb=2))
    _check(out2,
           ref_forward(x2, params2, stride2, quantized=True),
           ref_forward(x2, params2, stride2, quantized=False),
           (2, planes2, 16, 16))

    print("KERNEL_OK")
</pallas_src>

<mosaic_0001>
module attributes {stable_mosaic.version = 11 : i64} {
  func.func @kernel(%arg0: i32, %arg1: memref<4x9x9x4xbf16, #tpu.memory_space<vmem>>, %arg2: memref<36x16xbf16, #tpu.memory_space<vmem>>, %arg3: memref<1x16xf32, #tpu.memory_space<vmem>>, %arg4: memref<148x16xbf16, #tpu.memory_space<vmem>>, %arg5: memref<1x16xf32, #tpu.memory_space<vmem>>, %arg6: memref<64x16xf32, #tpu.memory_space<vmem>>, %arg7: memref<64x36xbf16, #tpu.memory_space<vmem>>, %arg8: memref<1x10x10x16xbf16, #tpu.memory_space<vmem>>, %arg9: memref<64x148xbf16, #tpu.memory_space<vmem>>) attributes {dimension_semantics = [#tpu.dimension_semantics<parallel>], iteration_bounds = array<i64: 2>, scalar_prefetch = 0 : i64, scratch_operands = 3 : i64, tpu.core_type = #tpu.core_type<tc>, window_params = [{transform_indices = @transform_0, window_bounds = array<i64: 4, 9, 9, 4>}, {pipeline_mode = #tpu.pipeline_mode<synchronous>, transform_indices = @transform_1, window_bounds = array<i64: 36, 16>}, {pipeline_mode = #tpu.pipeline_mode<synchronous>, transform_indices = @transform_2, window_bounds = array<i64: 1, 16>}, {pipeline_mode = #tpu.pipeline_mode<synchronous>, transform_indices = @transform_3, window_bounds = array<i64: 148, 16>}, {pipeline_mode = #tpu.pipeline_mode<synchronous>, transform_indices = @transform_4, window_bounds = array<i64: 1, 16>}, {transform_indices = @transform_5, window_bounds = array<i64: 64, 16>}]} {
    %c0 = arith.constant 0 : index
    %c0_0 = arith.constant 0 : index
    %c0_1 = arith.constant 0 : index
    %c0_2 = arith.constant 0 : index
    %0 = vector.load %arg1[%c0, %c0_0, %c0_1, %c0_2] : memref<4x9x9x4xbf16, #tpu.memory_space<vmem>>, vector<1x8x8x4xbf16>
    %1 = vector.shape_cast %0 : vector<1x8x8x4xbf16> to vector<8x8x4xbf16>
    %2 = vector.shape_cast %1 : vector<8x8x4xbf16> to vector<64x4xbf16>
    %c0_3 = arith.constant 0 : index
    %c0_4 = arith.constant 0 : index
    %3 = vector.load %arg7[%c0_3, %c0_4] : memref<64x36xbf16, #tpu.memory_space<vmem>>, vector<64x4xbf16>
    tpu.vector_store %arg7[%c0_3, %c0_4], %2 {strides = array<i32>} : memref<64x36xbf16, #tpu.memory_space<vmem>>, vector<64x4xbf16>,
    %c1 = arith.constant 1 : index
    %c0_5 = arith.constant 0 : index
    %c0_6 = arith.constant 0 : index
    %c0_7 = arith.constant 0 : index
    %4 = vector.load %arg1[%c1, %c0_5, %c0_6, %c0_7] : memref<4x9x9x4xbf16, #tpu.memory_space<vmem>>, vector<1x8x8x4xbf16>
    %5 = vector.shape_cast %4 : vector<1x8x8x4xbf16> to vector<8x8x4xbf16>
    %6 = vector.shape_cast %5 : vector<8x8x4xbf16> to vector<64x4xbf16>
    %c0_8 = arith.constant 0 : index
    %c4 = arith.constant 4 : index
    %7 = vector.load %arg7[%c0_8, %c4] : memref<64x36xbf16, #tpu.memory_space<vmem>>, vector<64x4xbf16>
    tpu.vector_store %arg7[%c0_8, %c4], %6 {strides = array<i32>} : memref<64x36xbf16, #tpu.memory_space<vmem>>, vector<64x4xbf16>,
    %c0_9 = arith.constant 0 : index
    %c0_10 = arith.constant 0 : index
    %c1_11 = arith.constant 1 : index
    %c0_12 = arith.constant 0 : index
    %8 = vector.load %arg1[%c0_9, %c0_10, %c1_11, %c0_12] : memref<4x9x9x4xbf16, #tpu.memory_space<vmem>>, vector<1x8x8x4xbf16>
    %9 = vector.shape_cast %8 : vector<1x8x8x4xbf16> to vector<8x8x4xbf16>
    %10 = vector.shape_cast %9 : vector<8x8x4xbf16> to vector<64x4xbf16>
    %c0_13 = arith.constant 0 : index
    %c8 = arith.constant 8 : index
    %11 = vector.load %arg7[%c0_13, %c8] : memref<64x36xbf16, #tpu.memory_space<vmem>>, vector<64x4xbf16>
    tpu.vector_store %arg7[%c0_13, %c8], %10 {strides = array<i32>} : memref<64x36xbf16, #tpu.memory_space<vmem>>, vector<64x4xbf16>,
    %c2 = arith.constant 2 : index
    %c0_14 = arith.constant 0 : index
    %c0_15 = arith.constant 0 : index
    %c0_16 = arith.constant 0 : index
    %12 = vector.load %arg1[%c2, %c0_14, %c0_15, %c0_16] : memref<4x9x9x4xbf16, #tpu.memory_space<vmem>>, vector<1x8x8x4xbf16>
    %13 = vector.shape_cast %12 : vector<1x8x8x4xbf16> to vector<8x8x4xbf16>
    %14 = vector.shape_cast %13 : vector<8x8x4xbf16> to vector<64x4xbf16>
    %c0_17 = arith.constant 0 : index
    %c12 = arith.constant 12 : index
    %15 = vector.load %arg7[%c0_17, %c12] : memref<64x36xbf16, #tpu.memory_space<vmem>>, vector<64x4xbf16>
    tpu.vector_store %arg7[%c0_17, %c12], %14 {strides = array<i32>} : memref<64x36xbf16, #tpu.memory_space<vmem>>, vector<64x4xbf16>,
    %c3 = arith.constant 3 : index
    %c0_18 = arith.constant 0 : index
    %c0_19 = arith.constant 0 : index
    %c0_20 = arith.constant 0 : index
    %16 = vector.load %arg1[%c3, %c0_18, %c0_19, %c0_20] : memref<4x9x9x4xbf16, #tpu.memory_space<vmem>>, vector<1x8x8x4xbf16>
    %17 = vector.shape_cast %16 : vector<1x8x8x4xbf16> to vector<8x8x4xbf16>
    %18 = vector.shape_cast %17 : vector<8x8x4xbf16> to vector<64x4xbf16>
    %c0_21 = arith.constant 0 : index
    %c16 = arith.constant 16 : index
    %19 = vector.load %arg7[%c0_21, %c16] : memref<64x36xbf16, #tpu.memory_space<vmem>>, vector<64x4xbf16>
    tpu.vector_store %arg7[%c0_21, %c16], %18 {strides = array<i32>} : memref<64x36xbf16, #tpu.memory_space<vmem>>, vector<64x4xbf16>,
    %c2_22 = arith.constant 2 : index
    %c0_23 = arith.constant 0 : index
    %c1_24 = arith.constant 1 : index
    %c0_25 = arith.constant 0 : index
    %20 = vector.load %arg1[%c2_22, %c0_23, %c1_24, %c0_25] : memref<4x9x9x4xbf16, #tpu.memory_space<vmem>>, vector<1x8x8x4xbf16>
    %21 = vector.shape_cast %20 : vector<1x8x8x4xbf16> to vector<8x8x4xbf16>
    %22 = vector.shape_cast %21 : vector<8x8x4xbf16> to vector<64x4xbf16>
    %c0_26 = arith.constant 0 : index
    %c20 = arith.constant 20 : index
    %23 = vector.load %arg7[%c0_26, %c20] : memref<64x36xbf16, #tpu.memory_space<vmem>>, vector<64x4xbf16>
    tpu.vector_store %arg7[%c0_26, %c20], %22 {strides = array<i32>} : memref<64x36xbf16, #tpu.memory_space<vmem>>, vector<64x4xbf16>,
    %c0_27 = arith.constant 0 : index
    %c1_28 = arith.constant 1 : index
    %c0_29 = arith.constant 0 : index
    %c0_30 = arith.constant 0 : index
    %24 = vector.load %arg1[%c0_27, %c1_28, %c0_29, %c0_30] : memref<4x9x9x4xbf16, #tpu.memory_space<vmem>>, vector<1x8x8x4xbf16>
    %25 = vector.shape_cast %24 : vector<1x8x8x4xbf16> to vector<8x8x4xbf16>
    %26 = vector.shape_cast %25 : vector<8x8x4xbf16> to vector<64x4xbf16>
    %c0_31 = arith.constant 0 : index
    %c24 = arith.constant 24 : index
    %27 = vector.load %arg7[%c0_31, %c24] : memref<64x36xbf16, #tpu.memory_space<vmem>>, vector<64x4xbf16>
    tpu.vector_store %arg7[%c0_31, %c24], %26 {strides = array<i32>} : memref<64x36xbf16, #tpu.memory_space<vmem>>, vector<64x4xbf16>,
    %c1_32 = arith.constant 1 : index
    %c1_33 = arith.constant 1 : index
    %c0_34 = arith.constant 0 : index
    %c0_35 = arith.constant 0 : index
    %28 = vector.load %arg1[%c1_32, %c1_33, %c0_34, %c0_35] : memref<4x9x9x4xbf16, #tpu.memory_space<vmem>>, vector<1x8x8x4xbf16>
    %29 = vector.shape_cast %28 : vector<1x8x8x4xbf16> to vector<8x8x4xbf16>
    %30 = vector.shape_cast %29 : vector<8x8x4xbf16> to vector<64x4xbf16>
    %c0_36 = arith.constant 0 : index
    %c28 = arith.constant 28 : index
    %31 = vector.load %arg7[%c0_36, %c28] : memref<64x36xbf16, #tpu.memory_space<vmem>>, vector<64x4xbf16>
    tpu.vector_store %arg7[%c0_36, %c28], %30 {strides = array<i32>} : memref<64x36xbf16, #tpu.memory_space<vmem>>, vector<64x4xbf16>,
    %c0_37 = arith.constant 0 : index
    %c1_38 = arith.constant 1 : index
    %c1_39 = arith.constant 1 : index
    %c0_40 = arith.constant 0 : index
    %32 = vector.load %arg1[%c0_37, %c1_38, %c1_39, %c0_40] : memref<4x9x9x4xbf16, #tpu.memory_space<vmem>>, vector<1x8x8x4xbf16>
    %33 = vector.shape_cast %32 : vector<1x8x8x4xbf16> to vector<8x8x4xbf16>
    %34 = vector.shape_cast %33 : vector<8x8x4xbf16> to vector<64x4xbf16>
    %c0_41 = arith.constant 0 : index
    %c32 = arith.constant 32 : index
    %35 = vector.load %arg7[%c0_41, %c32] : memref<64x36xbf16, #tpu.memory_space<vmem>>, vector<64x4xbf16>
    tpu.vector_store %arg7[%c0_41, %c32], %34 {strides = array<i32>} : memref<64x36xbf16, #tpu.memory_space<vmem>>, vector<64x4xbf16>,
    %c0_42 = arith.constant 0 : index
    %c0_43 = arith.constant 0 : index
    %36 = vector.load %arg7[%c0_42, %c0_43] : memref<64x36xbf16, #tpu.memory_space<vmem>>, vector<64x36xbf16>
    %c0_44 = arith.constant 0 : index
    %c0_45 = arith.constant 0 : index
    %37 = vector.load %arg2[%c0_44, %c0_45] : memref<36x16xbf16, #tpu.memory_space<vmem>>, vector<36x16xbf16>
    %cst = arith.constant dense<0.000000e+00> : vector<64x16xf32>
    %38 = tpu.matmul %36, %37, %cst {dimension_numbers = #tpu.dot_dimension_numbers<[1], [0], [0], [1], [0, 0, 1, 1], [], []>} : vector<64x36xbf16>, vector<36x16xbf16>, vector<64x16xf32> -> vector<64x16xf32>
    %c0_46 = arith.constant 0 : index
    %c0_47 = arith.constant 0 : index
    %39 = vector.load %arg3[%c0_46, %c0_47] : memref<1x16xf32, #tpu.memory_space<vmem>>, vector<1x16xf32>
    %40 = vector.broadcast %39 : vector<1x16xf32> to vector<64x16xf32>
    %41 = arith.addf %38, %40 : vector<64x16xf32>
    %cst_48 = arith.constant 0.000000e+00 : f32
    %42 = vector.broadcast %cst_48 : f32 to vector<64x16xf32>
    %43 = arith.maximumf %41, %42 : vector<64x16xf32>
    %44 = arith.truncf %43 : vector<64x16xf32> to vector<64x16xbf16>
    %cst_49 = arith.constant 0.000000e+00 : bf16
    %45 = vector.broadcast %cst_49 : bf16 to vector<1x1x10x16xbf16>
    %cst_50 = arith.constant 0.000000e+00 : bf16
    %46 = vector.broadcast %cst_50 : bf16 to vector<1x10x1x16xbf16>
    %c0_51 = arith.constant 0 : index
    %c0_52 = arith.constant 0 : index
    %c0_53 = arith.constant 0 : index
    %c0_54 = arith.constant 0 : index
    %47 = vector.load %arg8[%c0_51, %c0_52, %c0_53, %c0_54] : memref<1x10x10x16xbf16, #tpu.memory_space<vmem>>, vector<1x1x10x16xbf16>
    tpu.vector_store %arg8[%c0_51, %c0_52, %c0_53, %c0_54], %45 {strides = array<i32>} : memref<1x10x10x16xbf16, #tpu.memory_space<vmem>>, vector<1x1x10x16xbf16>,
    %c0_55 = arith.constant 0 : index
    %c9 = arith.constant 9 : index
    %c0_56 = arith.constant 0 : index
    %c0_57 = arith.constant 0 : index
    %48 = vector.load %arg8[%c0_55, %c9, %c0_56, %c0_57] : memref<1x10x10x16xbf16, #tpu.memory_space<vmem>>, vector<1x1x10x16xbf16>
    tpu.vector_store %arg8[%c0_55, %c9, %c0_56, %c0_57], %45 {strides = array<i32>} : memref<1x10x10x16xbf16, #tpu.memory_space<vmem>>, vector<1x1x10x16xbf16>,
    %c0_58 = arith.constant 0 : index
    %c0_59 = arith.constant 0 : index
    %c0_60 = arith.constant 0 : index
    %c0_61 = arith.constant 0 : index
    %49 = vector.load %arg8[%c0_58, %c0_59, %c0_60, %c0_61] : memref<1x10x10x16xbf16, #tpu.memory_space<vmem>>, vector<1x10x1x16xbf16>
    tpu.vector_store %arg8[%c0_58, %c0_59, %c0_60, %c0_61], %46 {strides = array<i32>} : memref<1x10x10x16xbf16, #tpu.memory_space<vmem>>, vector<1x10x1x16xbf16>,
    %c0_62 = arith.constant 0 : index
    %c0_63 = arith.constant 0 : index
    %c9_64 = arith.constant 9 : index
    %c0_65 = arith.constant 0 : index
    %50 = vector.load %arg8[%c0_62, %c0_63, %c9_64, %c0_65] : memref<1x10x10x16xbf16, #tpu.memory_space<vmem>>, vector<1x10x1x16xbf16>
    tpu.vector_store %arg8[%c0_62, %c0_63, %c9_64, %c0_65], %46 {strides = array<i32>} : memref<1x10x10x16xbf16, #tpu.memory_space<vmem>>, vector<1x10x1x16xbf16>,
    %51 = vector.shape_cast %44 : vector<64x16xbf16> to vector<1x8x8x16xbf16>
    %c0_66 = arith.constant 0 : index
    %c1_67 = arith.constant 1 : index
    %c1_68 = arith.constant 1 : index
    %c0_69 = arith.constant 0 : index
    %52 = vector.load %arg8[%c0_66, %c1_67, %c1_68, %c0_69] : memref<1x10x10x16xbf16, #tpu.memory_space<vmem>>, vector<1x8x8x16xbf16>
    tpu.vector_store %arg8[%c0_66, %c1_67, %c1_68, %c0_69], %51 {strides = array<i32>} : memref<1x10x10x16xbf16, #tpu.memory_space<vmem>>, vector<1x8x8x16xbf16>,
    %c0_70 = arith.constant 0 : index
    %c0_71 = arith.constant 0 : index
    %c0_72 = arith.constant 0 : index
    %c0_73 = arith.constant 0 : index
    %53 = vector.load %arg8[%c0_70, %c0_71, %c0_72, %c0_73] : memref<1x10x10x16xbf16, #tpu.memory_space<vmem>>, vector<1x8x8x16xbf16>
    %54 = vector.shape_cast %53 : vector<1x8x8x16xbf16> to vector<8x8x16xbf16>
    %55 = vector.shape_cast %54 : vector<8x8x16xbf16> to vector<64x16xbf16>
    %c0_74 = arith.constant 0 : index
    %c0_75 = arith.constant 0 : index
    %56 = vector.load %arg9[%c0_74, %c0_75] : memref<64x148xbf16, #tpu.memory_space<vmem>>, vector<64x16xbf16>
    tpu.vector_store %arg9[%c0_74, %c0_75], %55 {strides = array<i32>} : memref<64x148xbf16, #tpu.memory_space<vmem>>, vector<64x16xbf16>,
    %c0_76 = arith.constant 0 : index
    %c0_77 = arith.constant 0 : index
    %c1_78 = arith.constant 1 : index
    %c0_79 = arith.constant 0 : index
    %57 = vector.load %arg8[%c0_76, %c0_77, %c1_78, %c0_79] : memref<1x10x10x16xbf16, #tpu.memory_space<vmem>>, vector<1x8x8x16xbf16>
    %58 = vector.shape_cast %57 : vector<1x8x8x16xbf16> to vector<8x8x16xbf16>
    %59 = vector.shape_cast %58 : vector<8x8x16xbf16> to vector<64x16xbf16>
    %c0_80 = arith.constant 0 : index
    %c16_81 = arith.constant 16 : index
    %60 = vector.load %arg9[%c0_80, %c16_81] : memref<64x148xbf16, #tpu.memory_space<vmem>>, vector<64x16xbf16>
    tpu.vector_store %arg9[%c0_80, %c16_81], %59 {strides = array<i32>} : memref<64x148xbf16, #tpu.memory_space<vmem>>, vector<64x16xbf16>,
    %c0_82 = arith.constant 0 : index
    %c0_83 = arith.constant 0 : index
    %c2_84 = arith.constant 2 : index
    %c0_85 = arith.constant 0 : index
    %61 = vector.load %arg8[%c0_82, %c0_83, %c2_84, %c0_85] : memref<1x10x10x16xbf16, #tpu.memory_space<vmem>>, vector<1x8x8x16xbf16>
    %62 = vector.shape_cast %61 : vector<1x8x8x16xbf16> to vector<8x8x16xbf16>
    %63 = vector.shape_cast %62 : vector<8x8x16xbf16> to vector<64x16xbf16>
    %c0_86 = arith.constant 0 : index
    %c32_87 = arith.constant 32 : index
    %64 = vector.load %arg9[%c0_86, %c32_87] : memref<64x148xbf16, #tpu.memory_space<vmem>>, vector<64x16xbf16>
    tpu.vector_store %arg9[%c0_86, %c32_87], %63 {strides = array<i32>} : memref<64x148xbf16, #tpu.memory_space<vmem>>, vector<64x16xbf16>,
    %c0_88 = arith.constant 0 : index
    %c1_89 = arith.constant 1 : index
    %c0_90 = arith.constant 0 : index
    %c0_91 = arith.constant 0 : index
    %65 = vector.load %arg8[%c0_88, %c1_89, %c0_90, %c0_91] : memref<1x10x10x16xbf16, #tpu.memory_space<vmem>>, vector<1x8x8x16xbf16>
    %66 = vector.shape_cast %65 : vector<1x8x8x16xbf16> to vector<8x8x16xbf16>
    %67 = vector.shape_cast %66 : vector<8x8x16xbf16> to vector<64x16xbf16>
    %c0_92 = arith.constant 0 : index
    %c48 = arith.constant 48 : index
    %68 = vector.load %arg9[%c0_92, %c48] : memref<64x148xbf16, #tpu.memory_space<vmem>>, vector<64x16xbf16>
    tpu.vector_store %arg9[%c0_92, %c48], %67 {strides = array<i32>} : memref<64x148xbf16, #tpu.memory_space<vmem>>, vector<64x16xbf16>,
    %c0_93 = arith.constant 0 : index
    %c1_94 = arith.constant 1 : index
    %c1_95 = arith.constant 1 : index
    %c0_96 = arith.constant 0 : index
    %69 = vector.load %arg8[%c0_93, %c1_94, %c1_95, %c0_96] : memref<1x10x10x16xbf16, #tpu.memory_space<vmem>>, vector<1x8x8x16xbf16>
    %70 = vector.shape_cast %69 : vector<1x8x8x16xbf16> to vector<8x8x16xbf16>
    %71 = vector.shape_cast %70 : vector<8x8x16xbf16> to vector<64x16xbf16>
    %c0_97 = arith.constant 0 : index
    %c64 = arith.constant 64 : index
    %72 = vector.load %arg9[%c0_97, %c64] : memref<64x148xbf16, #tpu.memory_space<vmem>>, vector<64x16xbf16>
    tpu.vector_store %arg9[%c0_97, %c64], %71 {strides = array<i32>} : memref<64x148xbf16, #tpu.memory_space<vmem>>, vector<64x16xbf16>,
    %c0_98 = arith.constant 0 : index
    %c1_99 = arith.constant 1 : index
    %c2_100 = arith.constant 2 : index
    %c0_101 = arith.constant 0 : index
    %73 = vector.load %arg8[%c0_98, %c1_99, %c2_100, %c0_101] : memref<1x10x10x16xbf16, #tpu.memory_space<vmem>>, vector<1x8x8x16xbf16>
    %74 = vector.shape_cast %73 : vector<1x8x8x16xbf16> to vector<8x8x16xbf16>
    %75 = vector.shape_cast %74 : vector<8x8x16xbf16> to vector<64x16xbf16>
    %c0_102 = arith.constant 0 : index
    %c80 = arith.constant 80 : index
    %76 = vector.load %arg9[%c0_102, %c80] : memref<64x148xbf16, #tpu.memory_space<vmem>>, vector<64x16xbf16>
    tpu.vector_store %arg9[%c0_102, %c80], %75 {strides = array<i32>} : memref<64x148xbf16, #tpu.memory_space<vmem>>, vector<64x16xbf16>,
    %c0_103 = arith.constant 0 : index
    %c2_104 = arith.constant 2 : index
    %c0_105 = arith.constant 0 : index
    %c0_106 = arith.constant 0 : index
    %77 = vector.load %arg8[%c0_103, %c2_104, %c0_105, %c0_106] : memref<1x10x10x16xbf16, #tpu.memory_space<vmem>>, vector<1x8x8x16xbf16>
    %78 = vector.shape_cast %77 : vector<1x8x8x16xbf16> to vector<8x8x16xbf16>
    %79 = vector.shape_cast %78 : vector<8x8x16xbf16> to vector<64x16xbf16>
    %c0_107 = arith.constant 0 : index
    %c96 = arith.constant 96 : index
    %80 = vector.load %arg9[%c0_107, %c96] : memref<64x148xbf16, #tpu.memory_space<vmem>>, vector<64x16xbf16>
    tpu.vector_store %arg9[%c0_107, %c96], %79 {strides = array<i32>} : memref<64x148xbf16, #tpu.memory_space<vmem>>, vector<64x16xbf16>,
    %c0_108 = arith.constant 0 : index
    %c2_109 = arith.constant 2 : index
    %c1_110 = arith.constant 1 : index
    %c0_111 = arith.constant 0 : index
    %81 = vector.load %arg8[%c0_108, %c2_109, %c1_110, %c0_111] : memref<1x10x10x16xbf16, #tpu.memory_space<vmem>>, vector<1x8x8x16xbf16>
    %82 = vector.shape_cast %81 : vector<1x8x8x16xbf16> to vector<8x8x16xbf16>
    %83 = vector.shape_cast %82 : vector<8x8x16xbf16> to vector<64x16xbf16>
    %c0_112 = arith.constant 0 : index
    %c112 = arith.constant 112 : index
    %84 = vector.load %arg9[%c0_112, %c112] : memref<64x148xbf16, #tpu.memory_space<vmem>>, vector<64x16xbf16>
    tpu.vector_store %arg9[%c0_112, %c112], %83 {strides = array<i32>} : memref<64x148xbf16, #tpu.memory_space<vmem>>, vector<64x16xbf16>,
    %c0_113 = arith.constant 0 : index
    %c2_114 = arith.constant 2 : index
    %c2_115 = arith.constant 2 : index
    %c0_116 = arith.constant 0 : index
    %85 = vector.load %arg8[%c0_113, %c2_114, %c2_115, %c0_116] : memref<1x10x10x16xbf16, #tpu.memory_space<vmem>>, vector<1x8x8x16xbf16>
    %86 = vector.shape_cast %85 : vector<1x8x8x16xbf16> to vector<8x8x16xbf16>
    %87 = vector.shape_cast %86 : vector<8x8x16xbf16> to vector<64x16xbf16>
    %c0_117 = arith.constant 0 : index
    %c128 = arith.constant 128 : index
    %88 = vector.load %arg9[%c0_117, %c128] : memref<64x148xbf16, #tpu.memory_space<vmem>>, vector<64x16xbf16>
    tpu.vector_store %arg9[%c0_117, %c128], %87 {strides = array<i32>} : memref<64x148xbf16, #tpu.memory_space<vmem>>, vector<64x16xbf16>,
    %c3_118 = arith.constant 3 : index
    %c0_119 = arith.constant 0 : index
    %c0_120 = arith.constant 0 : index
    %c0_121 = arith.constant 0 : index
    %89 = vector.load %arg1[%c3_118, %c0_119, %c0_120, %c0_121] : memref<4x9x9x4xbf16, #tpu.memory_space<vmem>>, vector<1x8x8x4xbf16>
    %90 = vector.shape_cast %89 : vector<1x8x8x4xbf16> to vector<8x8x4xbf16>
    %91 = vector.shape_cast %90 : vector<8x8x4xbf16> to vector<64x4xbf16>
    %c0_122 = arith.constant 0 : index
    %c144 = arith.constant 144 : index
    %92 = vector.load %arg9[%c0_122, %c144] : memref<64x148xbf16, #tpu.memory_space<vmem>>, vector<64x4xbf16>
    tpu.vector_store %arg9[%c0_122, %c144], %91 {strides = array<i32>} : memref<64x148xbf16, #tpu.memory_space<vmem>>, vector<64x4xbf16>,
    %c0_123 = arith.constant 0 : index
    %c0_124 = arith.constant 0 : index
    %93 = vector.load %arg9[%c0_123, %c0_124] : memref<64x148xbf16, #tpu.memory_space<vmem>>, vector<64x148xbf16>
    %c0_125 = arith.constant 0 : index
    %c0_126 = arith.constant 0 : index
    %94 = vector.load %arg4[%c0_125, %c0_126] : memref<148x16xbf16, #tpu.memory_space<vmem>>, vector<148x16xbf16>
    %cst_127 = arith.constant dense<0.000000e+00> : vector<64x16xf32>
    %95 = tpu.matmul %93, %94, %cst_127 {dimension_numbers = #tpu.dot_dimension_numbers<[1], [0], [0], [1], [0, 0, 1, 1], [], []>} : vector<64x148xbf16>, vector<148x16xbf16>, vector<64x16xf32> -> vector<64x16xf32>
    %c0_128 = arith.constant 0 : index
    %c0_129 = arith.constant 0 : index
    %96 = vector.load %arg5[%c0_128, %c0_129] : memref<1x16xf32, #tpu.memory_space<vmem>>, vector<1x16xf32>
    %97 = vector.broadcast %96 : vector<1x16xf32> to vector<64x16xf32>
    %98 = arith.addf %95, %97 : vector<64x16xf32>
    %cst_130 = arith.constant 0.000000e+00 : f32
    %99 = vector.broadcast %cst_130 : f32 to vector<64x16xf32>
    %100 = arith.maximumf %98, %99 : vector<64x16xf32>
    %c0_131 = arith.constant 0 : index
    %c0_132 = arith.constant 0 : index
    %101 = vector.load %arg6[%c0_131, %c0_132] : memref<64x16xf32, #tpu.memory_space<vmem>>, vector<64x16xf32>
    tpu.vector_store %arg6[%c0_131, %c0_132], %100 {strides = array<i32>} : memref<64x16xf32, #tpu.memory_space<vmem>>, vector<64x16xf32>,
    return
  }
  func.func @transform_0(%arg0: i32) -> (i32, i32, i32, i32) {
    %c0_i32 = arith.constant 0 : i32
    %c0_i32_0 = arith.constant 0 : i32
    %c0_i32_1 = arith.constant 0 : i32
    %c0_i32_2 = arith.constant 0 : i32
    return %arg0, %c0_i32, %c0_i32_0, %c0_i32_1 : i32, i32, i32, i32
  }
  func.func @transform_1(%arg0: i32) -> (i32, i32) {
    %c0_i32 = arith.constant 0 : i32
    %c0_i32_0 = arith.constant 0 : i32
    %c0_i32_1 = arith.constant 0 : i32
    return %c0_i32, %c0_i32_0 : i32, i32
  }
  func.func @transform_2(%arg0: i32) -> (i32, i32) {
    %c0_i32 = arith.constant 0 : i32
    %c0_i32_0 = arith.constant 0 : i32
    %c0_i32_1 = arith.constant 0 : i32
    return %c0_i32, %c0_i32_0 : i32, i32
  }
  func.func @transform_3(%arg0: i32) -> (i32, i32) {
    %c0_i32 = arith.constant 0 : i32
    %c0_i32_0 = arith.constant 0 : i32
    %c0_i32_1 = arith.constant 0 : i32
    return %c0_i32, %c0_i32_0 : i32, i32
  }
  func.func @transform_4(%arg0: i32) -> (i32, i32) {
    %c0_i32 = arith.constant 0 : i32
    %c0_i32_0 = arith.constant 0 : i32
    %c0_i32_1 = arith.constant 0 : i32
    return %c0_i32, %c0_i32_0 : i32, i32
  }
  func.func @transform_5(%arg0: i32) -> (i32, i32) {
    %c0_i32 = arith.constant 0 : i32
    %c0_i32_0 = arith.constant 0 : i32
    return %arg0, %c0_i32 : i32, i32
  }
}

</mosaic_0001>

<bundles_post_ra>
// kernel: tpu_custom_call.1
= control target key start
LH: loop header
LB: loop body
LE: loop exit
PB: predicated region body
PF: predicated region fallthrough
CT: control target
= control target key end

     0   :  { %s2873_s18 = smov 0   ;;  %s3694_s0 = inlined_call_operand.vmem [shape: bf16[8,9,9,4], index: 0, kind: input, shape index: {}]   ;;  %s3695_s1 = inlined_call_operand.vmem [shape: bf16[36,16], index: 1, kind: input, shape index: {}]   ;;  %s3696_s2 = inlined_call_operand.vmem [shape: f32[1,16], index: 2, kind: input, shape index: {}]   ;;  %s3697_s3 = inlined_call_operand.vmem [shape: bf16[148,16], index: 3, kind: input, shape index: {}]   ;;  %s3698_s4 = inlined_call_operand.vmem [shape: f32[1,16], index: 4, kind: input, shape index: {}]   ;;  %s3699_s5 = inlined_call_operand.vmem [shape: f32[128,16], index: 5, kind: output, shape index: {}]  }
   0x1 LB: > { %s2561_s19 = sadd.s32 4294967295, %s2827_s18   ;;  %p2565_p0 = scmp.ge.s32.totalorder %s2827_s18, 1  ;;  %s2827_s18 = sphi %s2873_s18, %s15_s18  }
   0x2   : > { %p189_p1 = scmp.lt.s32.totalorder %s2827_s18, 3 }
   0x4   : > { %p190_p2 = pnand %p2565_p0, %p189_p1 }
   0x5   : > { %s2566_s20 = sshll.u32 (!%p190_p2), %s2561_s19, 2  ;;  %s2829_s25 = smov (!%p190_p2), 4  }
   0x6   : > { %193 = sbr.rel (%p190_p2) target bundleno = 892 (0x37c), region = 40  ;;  %p219_p3 = scmp.lt.s32.totalorder (!%p190_p2), %s2566_s20, 7 }
   0x7   : > { %s2830_s26 = smov (!%p190_p2), 12   ;;  %s2831_s27 = smov (!%p190_p2), 8  }
   0x8   : > { %s2832_s28 = smov (!%p190_p2), 16   ;;  %s2833_s29 = smov (!%p190_p2), 20  }
   0x9   : > { %s2834_s30 = smov (!%p190_p2), 24   ;;  %s2835_s6 = smov (!%p190_p2), 28  }
   0xa   : > { %s2836_s7 = smov (!%p190_p2), 32   ;;  %s2838_s14 = smov (!%p190_p2), 96  }
   0xb   : > { %s3711_s20 = smov (!%p219_p3, %s2566_s20), 7  ;;  %vm315_vm0 = vsmask.f32 3328  ;;  %vm316_vm1 = vsmask.f32 7440  ;;  %vm240_vm3 = vcmask 27648  }
   0xc   : > { %s2769_s21 = smul.u32 72, %s3711_s20  ;;  %vm2908_vm2 = vmor %vm315_vm0, %vm316_vm1  ;;  %vm1053_vm4 = vcmask 1041408   ;;  %vm290_vm5 = vcmask 60448   ;;  %vm454_vm6 = vcmask 93248   ;;  %vm504_vm7 = vcmask 126048   ;;  %s2839_s17 = smov 48  }
   0xd   : > { %vm554_vm8 = vcmask 158848   ;;  %vm715_vm9 = vcmask 191648   ;;  %vm765_vm10 = vcmask 224448   ;;  %vm815_vm11 = vcmask 257248   ;;  %s2840_s20 = smov 80   ;;  %s2842_s22 = smov 112  }
   0xe   : > { %s2886_s24 = scalar_lea.vmem %s3694_s0, %s2769_s21  ;;  %vm976_vm12 = vcmask 290048   ;;  %vm1040_vm13 = vcmask 293888   ;;  %vm1134_vm14 = vcmask 125952   ;;  %vm1136_vm15 = vcmask 122880   ;;  %s2841_s21 = smov 64  }
   0xf   : > { %v2572_v0 = vld [vmem:[%s2886_s24 + $0x58] sm:$0xf]  ;;  %v2570_v1 = vld [vmem:[%s2886_s24 + $0x48] sm:$0xf]  ;;  %v2573_v2 = vld [vmem:[%s2886_s24 + $0x60] sm:$0xf] }
  0x10   : > { %270 = vrot.lane.b32.xlu1 %v2572_v0, %s2829_s25  ;;  %266 = vrot.lane.b32.xlu0 %v2570_v1, %s2829_s25  ;;  %v2571_v3 = vld [vmem:[%s2886_s24 + $0x50] sm:$0xf]  ;;  %v301_v4 = vld [vmem:[%s2886_s24 + $0x8] sm:$0xf]  ;;  %vm1142_vm0 = vsmask.f32 256 }
  0x11   : > { %v302_v5 = vld [vmem:[%s2886_s24 + $0xc] sm:$0x1]  ;;  %v333_v6 = vshrl.u32 %v301_v4, 16  ;;  %v336_v7 = vshll.u32 %v301_v4, 16  ;;  %v299_v9 = vld [vmem:[%s2886_s24] sm:$0xf]  ;;  %vm3196_vm1 = vmand %vm1136_vm15, %vm1142_vm0 }
  0x12   : > { %v342_v8 = vshll.u32 %v302_v5, 16  ;;  %v2579_v10 = vld [vmem:[%s2886_s24 + $0x98] sm:$0xf]  ;;  %v2578_v11 = vld [vmem:[%s2886_s24 + $0x90] sm:$0xf]  ;;  %v319_v13 = vshrl.u32 %v299_v9, 16 }
  0x13   : > { %v300_v12 = vld [vmem:[%s2886_s24 + $0x4] sm:$0x1]  ;;  %v322_v14 = vshll.u32 %v299_v9, 16  ;;  %v305_v15 = vld [vmem:[%s2886_s24 + $0x18] sm:$0xf]  ;;  %v335_v16 = vrot.slane %v333_v6, 4 }
  0x14   : > { %272 = vrot.lane.b32.xlu1 %v2573_v2, %s2829_s25  ;;  %268 = vrot.lane.b32.xlu0 %v2571_v3, %s2829_s25  ;;  %v338_v17 = vrot.slane %v336_v7, 5  ;;  %v344_v18 = vrot.slane %v342_v8, 5  ;;  %v328_v19 = vshll.u32 %v300_v12, 16  ;;  %v306_v20 = vld [vmem:[%s2886_s24 + $0x1c] sm:$0x1]  ;;  %v321_v21 = vrot.slane %v319_v13, 4 }
  0x15   : > { %v324_v22 = vrot.slane %v322_v14, 5  ;;  %v361_v23 = vshrl.u32 %v305_v15, 16  ;;  %v364_v24 = vshll.u32 %v305_v15, 16  ;;  %v303_v25 = vld [vmem:[%s2886_s24 + $0x10] sm:$0xf]  ;;  %v370_v28 = vshll.u32 %v306_v20, 16 }
  0x16   : > { %v339_v26 = vor.u32 %v338_v17, %v335_v16  ;;  %v330_v27 = vrot.slane %v328_v19, 5  ;;  %v304_v29 = vld [vmem:[%s2886_s24 + $0x14] sm:$0x1]  ;;  %v347_v30 = vshrl.u32 %v303_v25, 16  ;;  %v350_v35 = vshll.u32 %v303_v25, 16 }
  0x17   : > { %v325_v32 = vor.u32 %v324_v22, %v321_v21  ;;  %v363_v33 = vrot.slane %v361_v23, 4  ;;  %v366_v34 = vrot.slane %v364_v24, 5  ;;  %v356_v38 = vshll.u32 %v304_v29, 16  ;;  %v2596_v48 = vld [vmem:[%s2886_s24 + $0x98] sm:$0xf] }
  0x18   : > { %482 = vrot.lane.b32.xlu1 %v2579_v10, %s2830_s26  ;;  %480 = vrot.lane.b32.xlu0 %v2578_v11, %s2830_s26  ;;  %v340_v36 = vrot.slane %v339_v26, 4  ;;  %v349_v37 = vrot.slane %v347_v30, 4  ;;  %v372_v41 = vrot.slane %v370_v28, 5  ;;  %v352_v42 = vrot.slane %v350_v35, 5  ;;  %v2594_v51 = vld [vmem:[%s2886_s24 + $0x90] sm:$0xf] }
  0x19   : > { %v326_v39 = vrot.slane %v325_v32, 4  ;;  %v367_v40 = vor.u32 %v366_v34, %v363_v33  ;;  %v358_v47 = vrot.slane %v356_v38, 5  ;;  %v594_v49 = vshrl.u32 %v2596_v48, 16  ;;  %v2600_v56 = vld [vmem:[%s2886_s24 + $0xa8] sm:$0xf] }
  0x1a   : > { %v345_v43 = vsel %vm2908_vm2, %v340_v36, %v344_v18  ;;  %v353_v46 = vor.u32 %v352_v42, %v349_v37  ;;  %v597_v50 = vshll.u32 %v2596_v48, 16  ;;  %v580_v54 = vshrl.u32 %v2594_v51, 16  ;;  %v2581_v58 = vld [vmem:[%s2886_s24 + $0xa8] sm:$0xf]  ;;  %v2580_v59 = vld [vmem:[%s2886_s24 + $0xa0] sm:$0xf] }
  0x1b   : > { %v331_v44 = vsel %vm2908_vm2, %v326_v39, %v330_v27  ;;  %v368_v45 = vrot.slane %v367_v40, 4  ;;  %v583_v55 = vshll.u32 %v2594_v51, 16  ;;  %v2597_v60 = vld [vmem:[%s2886_s24 + $0x9c] sm:$0x1]  ;;  %v596_v61 = vrot.slane %v594_v49, 4 }
  0x1c   : > { %432 = vrot.lane.b32.xlu1 %v345_v43, %s2831_s27  ;;  %430 = vrot.lane.b32.xlu0 %v331_v44, %s2831_s27  ;;  %v354_v53 = vrot.slane %v353_v46, 4  ;;  %v599_v62 = vrot.slane %v597_v50, 5  ;;  %v582_v63 = vrot.slane %v580_v54, 4  ;;  %v2598_v1 = vld [vmem:[%s2886_s24 + $0xa0] sm:$0xf]  ;;  %v622_v3 = vshrl.u32 %v2600_v56, 16 }
  0x1d   : > { %v373_v52 = vsel %vm2908_vm2, %v368_v45, %v372_v41  ;;  %v585_v0 = vrot.slane %v583_v55, 5  ;;  %v2595_v2 = vld [vmem:[%s2886_s24 + $0x94] sm:$0x1]  ;;  %v625_v4 = vshll.u32 %v2600_v56, 16  ;;  %v608_v5 = vshrl.u32 %v2598_v1, 16 }
  0x1e   : > { %v359_v57 = vsel %vm2908_vm2, %v354_v53, %v358_v47  ;;  %v611_v6 = vshll.u32 %v2598_v1, 16  ;;  %v2587_v7 = vld [vmem:[%s2886_s24 + $0xe0] sm:$0xf]  ;;  %v2586_v8 = vld [vmem:[%s2886_s24 + $0xd8] sm:$0xf]  ;;  %v600_v9 = vor.u32 %v599_v62, %v596_v61  ;;  %v603_v10 = vshll.u32 %v2597_v60, 16 }
  0x1f   : > { %v586_v11 = vor.u32 %v585_v0, %v582_v63  ;;  %v589_v12 = vshll.u32 %v2595_v2, 16  ;;  %v2601_v13 = vld [vmem:[%s2886_s24 + $0xac] sm:$0x1]  ;;  %v624_v14 = vrot.slane %v622_v3, 4  ;;  %v627_v15 = vrot.slane %v625_v4, 5 }
  0x20   : > { %436 = vrot.lane.b32.xlu1 %v373_v52, %s2831_s27  ;;  %434 = vrot.lane.b32.xlu0 %v359_v57, %s2831_s27  ;;  %v610_v16 = vrot.slane %v608_v5, 4  ;;  %v613_v17 = vrot.slane %v611_v6, 5  ;;  %v2599_v18 = vld [vmem:[%s2886_s24 + $0xa4] sm:$0x1]  ;;  %v601_v19 = vrot.slane %v600_v9, 4  ;;  %v605_v20 = vrot.slane %v603_v10, 5 }
  0x21   : > { %v591_v21 = vrot.slane %v589_v12, 5  ;;  %v631_v22 = vshll.u32 %v2601_v13, 16  ;;  %v2589_v23 = vld [vmem:[%s2886_s24 + $0xf0] sm:$0xf]  ;;  %v2588_v24 = vld [vmem:[%s2886_s24 + $0xe8] sm:$0xf]  ;;  %v628_v26 = vor.u32 %v627_v15, %v624_v14 }
  0x22   : > { %v587_v25 = vrot.slane %v586_v11, 4  ;;  %v614_v27 = vor.u32 %v613_v17, %v610_v16  ;;  %v617_v28 = vshll.u32 %v2599_v18, 16  ;;  %v606_v29 = vsel %vm2908_vm2, %v601_v19, %v605_v20  ;;  %v2628_v38 = vld [vmem:[%s2886_s24 + $0x10] sm:$0xf]  ;;  %v2626_v39 = vld [vmem:[%s2886_s24 + $0x8] sm:$0xf] }
  0x23   : > { %v633_v30 = vrot.slane %v631_v22, 5  ;;  %v629_v33 = vrot.slane %v628_v26, 4  ;;  %v2611_v40 = vld [vmem:[%s2886_s24 + $0x10] sm:$0xf]  ;;  %v855_v41 = vshrl.u32 %v2628_v38, 16  ;;  %v858_v42 = vshll.u32 %v2628_v38, 16 }
  0x24   : > { %486 = vrot.lane.b32.xlu1 %v2581_v58, %s2830_s26  ;;  %484 = vrot.lane.b32.xlu0 %v2580_v59, %s2830_s26  ;;  %v592_v32 = vsel %vm2908_vm2, %v587_v25, %v591_v21  ;;  %v615_v34 = vrot.slane %v614_v27, 4  ;;  %v619_v35 = vrot.slane %v617_v28, 5  ;;  %v2610_v43 = vld [vmem:[%s2886_s24 + $0x8] sm:$0xf]  ;;  %v841_v44 = vshrl.u32 %v2626_v39, 16 }
  0x25   : > { %v634_v36 = vsel %vm2908_vm2, %v629_v33, %v633_v30  ;;  %v844_v45 = vshll.u32 %v2626_v39, 16  ;;  %v2632_v46 = vld [vmem:[%s2886_s24 + $0x20] sm:$0xf]  ;;  %v2630_v47 = vld [vmem:[%s2886_s24 + $0x18] sm:$0xf]  ;;  %v857_v51 = vrot.slane %v855_v41, 4 }
  0x26   : > { %v620_v37 = vsel %vm2908_vm2, %v615_v34, %v619_v35  ;;  %v2613_v48 = vld [vmem:[%s2886_s24 + $0x20] sm:$0xf]  ;;  %v2612_v49 = vld [vmem:[%s2886_s24 + $0x18] sm:$0xf]  ;;  %v2629_v50 = vld [vmem:[%s2886_s24 + $0x14] sm:$0x1] }
  0x27   : > { %v860_v52 = vrot.slane %v858_v42, 5  ;;  %v883_v53 = vshrl.u32 %v2632_v46, 16  ;;  %v886_v54 = vshll.u32 %v2632_v46, 16  ;;  %v2627_v55 = vld [vmem:[%s2886_s24 + $0xc] sm:$0x1]  ;;  %v843_v56 = vrot.slane %v841_v44, 4 }
  0x28   : > { %532 = vrot.lane.b32.xlu1 %v2587_v7, %s2832_s28  ;;  %530 = vrot.lane.b32.xlu0 %v2586_v8, %s2832_s28  ;;  %v846_v57 = vrot.slane %v844_v45, 5  ;;  %v869_v58 = vshrl.u32 %v2630_v47, 16  ;;  %v872_v59 = vshll.u32 %v2630_v47, 16  ;;  %v2619_v60 = vld [vmem:[%s2886_s24 + $0x58] sm:$0xf]  ;;  %v864_v62 = vshll.u32 %v2629_v50, 16 }
  0x29   : > { %v2618_v61 = vld [vmem:[%s2886_s24 + $0x50] sm:$0xf]  ;;  %v850_v63 = vshll.u32 %v2627_v55, 16  ;;  %v885_v0 = vrot.slane %v883_v53, 4  ;;  %v888_v1 = vrot.slane %v886_v54, 5  ;;  %v861_v2 = vor.u32 %v860_v52, %v857_v51 }
  0x2a   : > { %v847_v3 = vor.u32 %v846_v57, %v843_v56  ;;  %v2633_v4 = vld [vmem:[%s2886_s24 + $0x24] sm:$0x1]  ;;  %v2631_v5 = vld [vmem:[%s2886_s24 + $0x1c] sm:$0x1]  ;;  %v871_v6 = vrot.slane %v869_v58, 4  ;;  %v874_v7 = vrot.slane %v872_v59, 5 }
  0x2b   : > { %v2621_v8 = vld [vmem:[%s2886_s24 + $0x68] sm:$0xf]  ;;  %v2620_v9 = vld [vmem:[%s2886_s24 + $0x60] sm:$0xf]  ;;  %v866_v10 = vrot.slane %v864_v62, 5  ;;  %v889_v11 = vor.u32 %v888_v1, %v885_v0  ;;  %v892_v12 = vshll.u32 %v2633_v4, 16 }
  0x2c   : > { %536 = vrot.lane.b32.xlu1 %v2589_v23, %s2832_s28  ;;  %534 = vrot.lane.b32.xlu0 %v2588_v24, %s2832_s28  ;;  %v878_v13 = vshll.u32 %v2631_v5, 16  ;;  %v309_v14 = vld [vmem:[%s2886_s24 + $0x28] sm:$0xf]  ;;  %v862_v15 = vrot.slane %v861_v2, 4  ;;  %v848_v16 = vrot.slane %v847_v3, 4  ;;  %v852_v17 = vrot.slane %v850_v63, 5 }
  0x2d   : > { %v875_v18 = vor.u32 %v874_v7, %v871_v6  ;;  %v307_v19 = vld [vmem:[%s2886_s24 + $0x20] sm:$0xf]  ;;  %v389_v20 = vshrl.u32 %v309_v14, 16  ;;  %v392_v21 = vshll.u32 %v309_v14, 16  ;;  %v890_v22 = vrot.slane %v889_v11, 4 }
  0x2e   : > { %v894_v23 = vrot.slane %v892_v12, 5  ;;  %v880_v24 = vrot.slane %v878_v13, 5  ;;  %v375_v25 = vshrl.u32 %v307_v19, 16  ;;  %v313_v26 = vld [vmem:[%s2886_s24 + $0x38] sm:$0xf]  ;;  %v867_v27 = vsel %vm2908_vm2, %v862_v15, %v866_v10 }
  0x2f   : > { %v853_v28 = vsel %vm2908_vm2, %v848_v16, %v852_v17  ;;  %v378_v30 = vshll.u32 %v307_v19, 16  ;;  %v234_v33 = vld [vmem:[%s2886_s24 + $0x10] sm:$0xf]  ;;  %v310_v34 = vld [vmem:[%s2886_s24 + $0x2c] sm:$0x1]  ;;  %v420_v41 = vshll.u32 %v313_v26, 16 }
  0x30   : > { %693 = vrot.lane.b32.xlu1 %v606_v29, %s2833_s29  ;;  %691 = vrot.lane.b32.xlu0 %v592_v32, %s2833_s29  ;;  %v876_v29 = vrot.slane %v875_v18, 4  ;;  %v311_v32 = vld [vmem:[%s2886_s24 + $0x30] sm:$0xf]  ;;  %243 = vst.msk [vmem:[#allocation2 + $0x8] sm:$0xf] %vm240_vm3, %v234_v33  ;;  %v895_v45 = vsel %vm2908_vm2, %v890_v22, %v894_v23  ;;  %v377_v47 = vrot.slane %v375_v25, 4 }
  0x31   : > { %v232_v35 = vld [vmem:[%s2886_s24] sm:$0xf]  ;;  %v308_v38 = vld [vmem:[%s2886_s24 + $0x24] sm:$0x1]  ;;  %v235_v39 = vld [vmem:[%s2886_s24 + $0x18] sm:$0xf] }
  0x32   : > { %241 = vst.msk [vmem:[#allocation2] sm:$0xf] %vm240_vm3, %v232_v35  ;;  %v403_v42 = vshrl.u32 %v311_v32, 16  ;;  %244 = vst.msk [vmem:[#allocation2 + $0xc] sm:$0xf] %vm240_vm3, %v235_v39  ;;  %v881_v46 = vsel %vm2908_vm2, %v876_v29, %v880_v24  ;;  %v398_v50 = vshll.u32 %v310_v34, 16 }
  0x33   : > { %v233_v44 = vld [vmem:[%s2886_s24 + $0x8] sm:$0xf]  ;;  %v384_v51 = vshll.u32 %v308_v38, 16  ;;  %v314_v52 = vld [vmem:[%s2886_s24 + $0x3c] sm:$0x1]  ;;  %v422_v54 = vrot.slane %v420_v41, 5 }
  0x34   : > { %697 = vrot.lane.b32.xlu1 %v634_v36, %s2833_s29  ;;  %695 = vrot.lane.b32.xlu0 %v620_v37, %s2833_s29  ;;  %v391_v36 = vrot.slane %v389_v20, 4  ;;  %v394_v37 = vrot.slane %v392_v21, 5  ;;  %242 = vst.msk [vmem:[#allocation2 + $0x4] sm:$0xf] %vm240_vm3, %v233_v44  ;;  %v312_v55 = vld [vmem:[%s2886_s24 + $0x34] sm:$0x1] }
  0x35   : > { %v405_v56 = vrot.slane %v403_v42, 4  ;;  %v2575_v58 = vld [vmem:[%s2886_s24 + $0x70] sm:$0xf]  ;;  %v2574_v59 = vld [vmem:[%s2886_s24 + $0x68] sm:$0xf]  ;;  %v400_v0 = vrot.slane %v398_v50, 5 }
  0x36   : > { %v2577_v62 = vld [vmem:[%s2886_s24 + $0x80] sm:$0xf]  ;;  %v2576_v63 = vld [vmem:[%s2886_s24 + $0x78] sm:$0xf]  ;;  %v412_v1 = vshll.u32 %v312_v55, 16  ;;  %v386_v4 = vrot.slane %v384_v51, 5 }
  0x37   : > { %v237_v2 = vld [vmem:[%s2886_s24 + $0x28] sm:$0xf]  ;;  %v2792_v7 = vld [vmem:[%s3695_s1 + $0x10] ss:$0 sps:$4 sm:$0x33]   ;;  %v2794_v16 = vld [vmem:[%s3695_s1] sm:$0xff]  }
  0x38   : > { %743 = vrot.lane.b32.xlu1 %v2611_v40, %s2834_s30  ;;  %741 = vrot.lane.b32.xlu0 %v2610_v43, %s2834_s30  ;;  %v417_v40 = vshrl.u32 %v313_v26, 16  ;;  %v406_v43 = vshll.u32 %v311_v32, 16  ;;  %246 = vst.msk [vmem:[#allocation2 + $0x14] sm:$0xf] %vm240_vm3, %v237_v2  ;;  %v236_v10 = vld [vmem:[%s2886_s24 + $0x20] sm:$0xf] }
  0x39   : > { %v239_v11 = vld [vmem:[%s2886_s24 + $0x38] sm:$0xf]  ;;  %2768 = vmatprep.subr.msk.bf16.mxu0 %vm1053_vm4, %v2792_v7  ;;  %v1055_v13 = vsel %vm1053_vm4, %v2792_v7, 0  ;;  %245 = vst.msk [vmem:[#allocation2 + $0x10] sm:$0xf] %vm240_vm3, %v236_v10  ;;  %v414_v15 = vrot.slane %v412_v1, 5 }
  0x3a   : > { %v419_v53 = vrot.slane %v417_v40, 4  ;;  %v408_v57 = vrot.slane %v406_v43, 5  ;;  %248 = vst.msk [vmem:[#allocation2 + $0x1c] sm:$0xf] %vm240_vm3, %v239_v11  ;;  %v238_v14 = vld [vmem:[%s2886_s24 + $0x30] sm:$0xf]  ;;  %2735 = vmatpush3.bf16.msra.mxu0 %v1055_v13 }
  0x3b   : > { %247 = vst.msk [vmem:[#allocation2 + $0x18] sm:$0xf] %vm240_vm3, %v238_v14  ;;  %v2604_v23 = vld [vmem:[%s2886_s24 + $0xb8] sm:$0xf]  ;;  %v2602_v24 = vld [vmem:[%s2886_s24 + $0xb0] sm:$0xf] }
  0x3c   : > { %747 = vrot.lane.b32.xlu1 %v2613_v48, %s2834_s30  ;;  %745 = vrot.lane.b32.xlu0 %v2612_v49, %s2834_s30  ;;  %v380_v48 = vrot.slane %v378_v30, 5  ;;  %v395_v49 = vor.u32 %v394_v37, %v391_v36  ;;  %v423_v5 = vor.u32 %v422_v54, %v419_v53  ;;  %v409_v6 = vor.u32 %v408_v57, %v405_v56  ;;  %v2583_v29 = vld [vmem:[%s2886_s24 + $0xb8] sm:$0xf]  ;;  %v2582_v30 = vld [vmem:[%s2886_s24 + $0xb0] sm:$0xf] }
  0x3d   : > { %v650_v25 = vshrl.u32 %v2604_v23, 16  ;;  %v653_v26 = vshll.u32 %v2604_v23, 16  ;;  %v2608_v32 = vld [vmem:[%s2886_s24 + $0xc8] sm:$0xf]  ;;  %v2606_v33 = vld [vmem:[%s2886_s24 + $0xc0] sm:$0xf] }
  0x3e   : > { %v396_v3 = vrot.slane %v395_v49, 4  ;;  %v424_v17 = vrot.slane %v423_v5, 4  ;;  %v410_v18 = vrot.slane %v409_v6, 4  ;;  %v2585_v34 = vld [vmem:[%s2886_s24 + $0xc8] sm:$0xf]  ;;  %v678_v42 = vshrl.u32 %v2608_v32, 16 }
  0x3f   : > { %v2584_v35 = vld [vmem:[%s2886_s24 + $0xc0] sm:$0xf]  ;;  %v2605_v36 = vld [vmem:[%s2886_s24 + $0xbc] sm:$0x1]  ;;  %v652_v37 = vrot.slane %v650_v25, 4  ;;  %v655_v38 = vrot.slane %v653_v26, 5 }
  0x40   : > { %793 = vrot.lane.b32.xlu1 %v2619_v60, %s2835_s6  ;;  %791 = vrot.lane.b32.xlu0 %v2618_v61, %s2835_s6  ;;  %v381_v60 = vor.u32 %v380_v48, %v377_v47  ;;  %v426_v61 = vshll.u32 %v314_v52, 16  ;;  %v401_v19 = vsel %vm2908_vm2, %v396_v3, %v400_v0  ;;  %v415_v22 = vsel %vm2908_vm2, %v410_v18, %v414_v15  ;;  %v2603_v41 = vld [vmem:[%s2886_s24 + $0xb4] sm:$0x1]  ;;  %v2590_v47 = vld [vmem:[%s2886_s24 + $0xf8] sm:$0xf] }
  0x41   : > { %v681_v43 = vshll.u32 %v2608_v32, 16  ;;  %v664_v44 = vshrl.u32 %v2606_v33, 16  ;;  %v656_v48 = vor.u32 %v655_v38, %v652_v37  ;;  %v659_v49 = vshll.u32 %v2605_v36, 16  ;;  %v2609_v52 = vld [vmem:[%s2886_s24 + $0xcc] sm:$0x1] }
  0x42   : > { %v428_v12 = vrot.slane %v426_v61, 5  ;;  %v645_v51 = vshll.u32 %v2603_v41, 16  ;;  %v680_v53 = vrot.slane %v678_v42, 4  ;;  %v2607_v57 = vld [vmem:[%s2886_s24 + $0xc4] sm:$0x1]  ;;  %v687_v61 = vshll.u32 %v2609_v52, 16 }
  0x43   : > { %v683_v54 = vrot.slane %v681_v43, 5  ;;  %v666_v55 = vrot.slane %v664_v44, 4  ;;  %v673_v3 = vshll.u32 %v2607_v57, 16  ;;  %v2634_v13 = vld [vmem:[%s2886_s24 + $0x28] sm:$0xf]  ;;  %vm2407_vm0 = vcmask 162816  }
  0x44   : > { %797 = vrot.lane.b32.xlu1 %v2621_v8, %s2835_s6  ;;  %795 = vrot.lane.b32.xlu0 %v2620_v9, %s2835_s6  ;;  %v382_v8 = vrot.slane %v381_v60, 4  ;;  %v2793_v9 = vld [vmem:[%s3695_s1 + $0x8] sm:$0xff]   ;;  %v429_v21 = vsel %vm2908_vm2, %v424_v17, %v428_v12  ;;  %v647_v60 = vrot.slane %v645_v51, 5  ;;  %v689_v5 = vrot.slane %v687_v61, 5  ;;  %v2636_v12 = vld [vmem:[%s2886_s24 + $0x30] sm:$0xf] }
  0x45   : > { %2736 = vmatprep.subr.bf16.mxu0 %v2793_v9  ;;  %v684_v1 = vor.u32 %v683_v54, %v680_v53  ;;  %v911_v14 = vshrl.u32 %v2636_v12, 16  ;;  %v914_v15 = vshll.u32 %v2636_v12, 16  ;;  %v900_v17 = vshll.u32 %v2634_v13, 16  ;;  %v2615_v18 = vld [vmem:[%s2886_s24 + $0x30] sm:$0xf] }
  0x46   : > { %v387_v20 = vsel %vm2908_vm2, %v382_v8, %v386_v4  ;;  %2737 = vmatpush3.bf16.msra.mxu0 %v2793_v9  ;;  %v675_v9 = vrot.slane %v673_v3, 5  ;;  %v2616_v23 = vld [vmem:[%s2886_s24 + $0x38] sm:$0xf]  ;;  %v2622_v36 = vld [vmem:[%s2886_s24 + $0x70] sm:$0xf] }
  0x47   : > { %2738 = vmatprep.subr.bf16.mxu0 %v2794_v16  ;;  %v685_v7 = vrot.slane %v684_v1, 4  ;;  %v913_v25 = vrot.slane %v911_v14, 4  ;;  %v916_v26 = vrot.slane %v914_v15, 5  ;;  %v2641_v41 = vld [vmem:[%s2886_s24 + $0x44] sm:$0x1] }
  0x48   : > { %954 = vrot.lane.b32.xlu1 %v867_v27, %s2836_s7  ;;  %952 = vrot.lane.b32.xlu0 %v853_v28, %s2836_s7  ;;  %v636_v27 = vshrl.u32 %v2602_v24, 16  ;;  %v639_v28 = vshll.u32 %v2602_v24, 16  ;;  %v2637_v24 = vld [vmem:[%s2886_s24 + $0x34] sm:$0x1]  ;;  %v2625_v51 = vld [vmem:[%s2886_s24 + $0x88] sm:$0xf] }
  0x49   : > { %v690_v10 = vsel %vm2908_vm2, %v685_v7, %v689_v5  ;;  %v917_v37 = vor.u32 %v916_v26, %v913_v25  ;;  %v920_v38 = vshll.u32 %v2637_v24, 16  ;;  %v2624_v52 = vld [vmem:[%s2886_s24 + $0x80] sm:$0xf]  ;;  %vm1174_vm3 = vsmask.f32 7938 }
  0x4a   : > { %2739 = vmatpush3.bf16.msra.mxu0 %v2794_v16  ;;  %v638_v39 = vrot.slane %v636_v27, 4  ;;  %v641_v40 = vrot.slane %v639_v28, 5  ;;  %v897_v16 = vshrl.u32 %v2634_v13, 16  ;;  %v902_v28 = vrot.slane %v900_v17, 5 }
  0x4c   : > { %958 = vrot.lane.b32.xlu1 %v895_v45, %s2836_s7  ;;  %956 = vrot.lane.b32.xlu0 %v881_v46, %s2836_s7  ;;  %v667_v45 = vshll.u32 %v2606_v33, 16  ;;  %v2591_v46 = vld [vmem:[%s2886_s24 + $0x100] sm:$0xf]  ;;  %v642_v50 = vor.u32 %v641_v40, %v638_v39  ;;  %v899_v27 = vrot.slane %v897_v16, 4 }
  0x4e   : > { %v669_v56 = vrot.slane %v667_v45, 5  ;;  %v643_v0 = vrot.slane %v642_v50, 4  ;;  %v903_v39 = vor.u32 %v902_v28, %v899_v27  ;;  %v948_v50 = vshll.u32 %v2641_v41, 16 }
  0x50   : > { %276 = vrot.lane.b32.xlu1 %v2575_v58, %s2829_s25  ;;  %274 = vrot.lane.b32.xlu0 %v2574_v59, %s2829_s25  ;;  %v657_v58 = vrot.slane %v656_v48, 4  ;;  %v661_v59 = vrot.slane %v659_v49, 5  ;;  %v670_v2 = vor.u32 %v669_v56, %v666_v55  ;;  %v648_v6 = vsel %vm2908_vm2, %v643_v0, %v647_v60 }
  0x51   : > { %v922_v48 = vrot.slane %v920_v38, 5  ;;  %v904_v53 = vrot.slane %v903_v39, 4  ;;  %v950_v60 = vrot.slane %v948_v50, 5 }
  0x52   : > { %v662_v4 = vsel %vm2908_vm2, %v657_v58, %v661_v59  ;;  %v671_v8 = vrot.slane %v670_v2, 4 }
  0x54   : > { %280 = vrot.lane.b32.xlu1 %v2577_v62, %s2829_s25  ;;  %278 = vrot.lane.b32.xlu0 %v2576_v63, %s2829_s25  ;;  %v2593_v62 = vld [vmem:[%s2886_s24 + $0x110] sm:$0xf]  ;;  %v2592_v63 = vld [vmem:[%s2886_s24 + $0x108] sm:$0xf]  ;;  %v676_v11 = vsel %vm2908_vm2, %v671_v8, %v675_v9 }
  0x58   : > { %440 = vrot.lane.b32.xlu1 %v401_v19, %s2831_s27  ;;  %438 = vrot.lane.b32.xlu0 %v387_v20, %s2831_s27  ;;  %v2614_v19 = vld [vmem:[%s2886_s24 + $0x28] sm:$0xf]  ;;  %v2640_v20 = vld [vmem:[%s2886_s24 + $0x40] sm:$0xf] }
  0x59   : > { %v942_v32 = vshll.u32 %v2640_v20, 16 }
  0x5b   : > { %v944_v43 = vrot.slane %v942_v32, 5 }
  0x5c   : > { %444 = vrot.lane.b32.xlu1 %v429_v21, %s2831_s27  ;;  %442 = vrot.lane.b32.xlu0 %v415_v22, %s2831_s27  ;;  %v2638_v21 = vld [vmem:[%s2886_s24 + $0x38] sm:$0xf]  ;;  %v2617_v22 = vld [vmem:[%s2886_s24 + $0x40] sm:$0xf] }
  0x5d   : > { %v925_v33 = vshrl.u32 %v2638_v21, 16 }
  0x5f   : > { %v927_v44 = vrot.slane %v925_v33, 4 }
  0x60   : > { %490 = vrot.lane.b32.xlu1 %v2583_v29, %s2830_s26  ;;  %488 = vrot.lane.b32.xlu0 %v2582_v30, %s2830_s26  ;;  %v2635_v29 = vld [vmem:[%s2886_s24 + $0x2c] sm:$0x1]  ;;  %v939_v30 = vshrl.u32 %v2640_v20, 16 }
  0x61   : > { %v906_v40 = vshll.u32 %v2635_v29, 16 }
  0x62   : > { %v941_v42 = vrot.slane %v939_v30, 4 }
  0x63   : > { %v908_v49 = vrot.slane %v906_v40, 5 }
  0x64   : > { %494 = vrot.lane.b32.xlu1 %v2585_v34, %s2830_s26  ;;  %492 = vrot.lane.b32.xlu0 %v2584_v35, %s2830_s26  ;;  %v928_v34 = vshll.u32 %v2638_v21, 16  ;;  %v2623_v35 = vld [vmem:[%s2886_s24 + $0x78] sm:$0xf]  ;;  %v945_v54 = vor.u32 %v944_v43, %v941_v42 }
  0x65   : > { %v909_v61 = vsel %vm2908_vm2, %v904_v53, %v908_v49 }
  0x66   : > { %v930_v45 = vrot.slane %v928_v34, 5 }
  0x68   : > { %540 = vrot.lane.b32.xlu1 %v2591_v46, %s2832_s28  ;;  %538 = vrot.lane.b32.xlu0 %v2590_v47, %s2832_s28  ;;  %v2639_v46 = vld [vmem:[%s2886_s24 + $0x3c] sm:$0x1]  ;;  %v918_v47 = vrot.slane %v917_v37, 4  ;;  %v931_v55 = vor.u32 %v930_v45, %v927_v44 }
  0x69   : > { %v934_v56 = vshll.u32 %v2639_v46, 16 }
  0x6a   : > { %v923_v59 = vsel %vm2908_vm2, %v918_v47, %v922_v48 }
  0x6b   : > { %v936_v0 = vrot.slane %v934_v56, 5 }
  0x6c   : > { %544 = vrot.lane.b32.xlu1 %v2593_v62, %s2832_s28  ;;  %542 = vrot.lane.b32.xlu0 %v2592_v63, %s2832_s28  ;;  %v946_v62 = vrot.slane %v945_v54, 4  ;;  %v932_v63 = vrot.slane %v931_v55, 4 }
  0x6e   : > { %v951_v3 = vsel %vm2908_vm2, %v946_v62, %v950_v60 }
  0x70   : > { %701 = vrot.lane.b32.xlu1 %v662_v4, %s2833_s29  ;;  %699 = vrot.lane.b32.xlu0 %v648_v6, %s2833_s29  ;;  %v937_v4 = vsel %vm2908_vm2, %v932_v63, %v936_v0 }
  0x74   : > { %705 = vrot.lane.b32.xlu1 %v690_v10, %s2833_s29  ;;  %703 = vrot.lane.b32.xlu0 %v676_v11, %s2833_s29 }
  0x78   : > { %751 = vrot.lane.b32.xlu1 %v2615_v18, %s2834_s30  ;;  %749 = vrot.lane.b32.xlu0 %v2614_v19, %s2834_s30 }
  0x7c   : > { %755 = vrot.lane.b32.xlu1 %v2617_v22, %s2834_s30  ;;  %753 = vrot.lane.b32.xlu0 %v2616_v23, %s2834_s30 }
  0x80   : > { %801 = vrot.lane.b32.xlu1 %v2623_v35, %s2835_s6  ;;  %799 = vrot.lane.b32.xlu0 %v2622_v36, %s2835_s6 }
  0x82   : > { %v271_v57 = vpop.permute.xlu1 %270  ;;  %v267_v58 = vpop.permute.xlu0 %266 }
  0x83   : > { %293 = vst.msk [vmem:[#allocation2 + $0x8] sm:$0xf] %vm290_vm5, %v271_v57  ;;  %291 = vst.msk [vmem:[#allocation2] sm:$0xf] %vm290_vm5, %v267_v58 }
  0x84   : > { %805 = vrot.lane.b32.xlu1 %v2625_v51, %s2835_s6  ;;  %803 = vrot.lane.b32.xlu0 %v2624_v52, %s2835_s6 }
  0x86   : > { %v273_v1 = vpop.permute.xlu1 %272  ;;  %v269_v2 = vpop.permute.xlu0 %268 }
  0x87   : > { %294 = vst.msk [vmem:[#allocation2 + $0xc] sm:$0xf] %vm290_vm5, %v273_v1  ;;  %292 = vst.msk [vmem:[#allocation2 + $0x4] sm:$0xf] %vm290_vm5, %v269_v2  ;;  %v2837_v2 = vmov 0  }
  0x88   : > { %962 = vrot.lane.b32.xlu1 %v923_v59, %s2836_s7  ;;  %960 = vrot.lane.b32.xlu0 %v909_v61, %s2836_s7  ;;  %1135 = vst.msk [vmem:[#allocation3] sm:$0xf] %vm1134_vm14, %v2837_v2  ;;  %1139 = vst.msk [vmem:[#allocation3 + $0x48] sm:$0xf] %vm1134_vm14, %v2837_v2 }
  0x89   : > { %2748 = vmatprep.subr.bf16.mxu1 %v2837_v2  ;;  %2423 = vmatprep.subr.bf16.mxu0 %v2837_v2  ;;  %1137 = vst.msk [vmem:[#allocation3 + $0x4] sm:$0x1] %vm1136_vm15, %v2837_v2  ;;  %1140 = vst.msk [vmem:[#allocation3 + $0x4c] sm:$0x1] %vm1136_vm15, %v2837_v2 }
  0x8a   : > { %v483_v5 = vpop.permute.xlu1 %482  ;;  %v481_v6 = vpop.permute.xlu0 %480 }
  0x8c   : > { %966 = vrot.lane.b32.xlu1 %v951_v3, %s2836_s7  ;;  %964 = vrot.lane.b32.xlu0 %v937_v4, %s2836_s7 }
  0x8e   : > { %v433_v7 = vpop.permute.xlu1 %432  ;;  %v431_v8 = vpop.permute.xlu0 %430 }
  0x8f   : > { %456 = vst.msk [vmem:[#allocation2 + $0x4] sm:$0xf] %vm454_vm6, %v433_v7  ;;  %455 = vst.msk [vmem:[#allocation2] sm:$0xf] %vm454_vm6, %v431_v8  ;;  %v1144_v7 = vld [vmem:[#allocation3] sm:$0x1] }
  0x90   : > { %505 = vst.msk [vmem:[#allocation2] sm:$0xf] %vm504_vm7, %v481_v6  ;;  %506 = vst.msk [vmem:[#allocation2 + $0x4] sm:$0xf] %vm504_vm7, %v483_v5  ;;  %v1145_v8 = vsel %vm3196_vm1, 0, %v1144_v7 }
  0x91   : > { %1146 = vst [vmem:[#allocation3] sm:$0x1] %v1145_v8  ;;  %v1194_v7 = vld [vmem:[#allocation3 + $0x34] sm:$0x1] }
  0x92   : > { %v437_v9 = vpop.permute.xlu1 %436  ;;  %v435_v10 = vpop.permute.xlu0 %434 }
  0x93   : > { %458 = vst.msk [vmem:[#allocation2 + $0xc] sm:$0xf] %vm454_vm6, %v437_v9  ;;  %457 = vst.msk [vmem:[#allocation2 + $0x8] sm:$0xf] %vm454_vm6, %v435_v10  ;;  %v1176_v10 = vld [vmem:[#allocation3 + $0x4] sm:$0x1] }
  0x96   : > { %v487_v11 = vpop.permute.xlu1 %486  ;;  %v485_v12 = vpop.permute.xlu0 %484 }
  0x97   : > { %508 = vst.msk [vmem:[#allocation2 + $0xc] sm:$0xf] %vm504_vm7, %v487_v11  ;;  %507 = vst.msk [vmem:[#allocation2 + $0x8] sm:$0xf] %vm504_vm7, %v485_v12 }
  0x9a   : > { %v533_v13 = vpop.permute.xlu1 %532  ;;  %v531_v14 = vpop.permute.xlu0 %530 }
  0x9b   : > { %556 = vst.msk [vmem:[#allocation2 + $0x4] sm:$0xf] %vm554_vm8, %v533_v13  ;;  %555 = vst.msk [vmem:[#allocation2] sm:$0xf] %vm554_vm8, %v531_v14  ;;  %v1153_v13 = vld [vmem:[#allocation3 + $0x18] sm:$0x1] }
  0x9c   : > { %v1185_v14 = vld [vmem:[#allocation3 + $0x1c] sm:$0x1] }
  0x9e   : > { %v537_v15 = vpop.permute.xlu1 %536  ;;  %v535_v16 = vpop.permute.xlu0 %534 }
  0x9f   : > { %558 = vst.msk [vmem:[#allocation2 + $0xc] sm:$0xf] %vm554_vm8, %v537_v15  ;;  %557 = vst.msk [vmem:[#allocation2 + $0x8] sm:$0xf] %vm554_vm8, %v535_v16  ;;  %v1203_v15 = vld [vmem:[#allocation3 + $0x4c] sm:$0x1] }
  0xa0   : > { %v1154_v16 = vsel %vm3196_vm1, 0, %v1153_v13 }
  0xa1   : > { %1155 = vst [vmem:[#allocation3 + $0x18] sm:$0x1] %v1154_v16 }
  0xa2   : > { %v694_v17 = vpop.permute.xlu1 %693  ;;  %v692_v18 = vpop.permute.xlu0 %691 }
  0xa3   : > { %717 = vst.msk [vmem:[#allocation2 + $0x4] sm:$0xf] %vm715_vm9, %v694_v17  ;;  %716 = vst.msk [vmem:[#allocation2] sm:$0xf] %vm715_vm9, %v692_v18 }
  0xa6   : > { %v698_v19 = vpop.permute.xlu1 %697  ;;  %v696_v20 = vpop.permute.xlu0 %695 }
  0xa7   : > { %719 = vst.msk [vmem:[#allocation2 + $0xc] sm:$0xf] %vm715_vm9, %v698_v19  ;;  %718 = vst.msk [vmem:[#allocation2 + $0x8] sm:$0xf] %vm715_vm9, %v696_v20  ;;  %v1147_v19 = vld [vmem:[#allocation3 + $0x8] sm:$0x1] }
  0xa8   : > { %v1179_v20 = vld [vmem:[#allocation3 + $0xc] sm:$0x1] }
  0xaa   : > { %v744_v21 = vpop.permute.xlu1 %743  ;;  %v742_v22 = vpop.permute.xlu0 %741 }
  0xab   : > { %767 = vst.msk [vmem:[#allocation2 + $0x4] sm:$0xf] %vm765_vm10, %v744_v21  ;;  %766 = vst.msk [vmem:[#allocation2] sm:$0xf] %vm765_vm10, %v742_v22  ;;  %v1373_v21 = vld [vmem:[#allocation3] sm:$0xf] }
  0xac   : > { %v1148_v22 = vsel %vm3196_vm1, 0, %v1147_v19 }
  0xad   : > { %1149 = vst [vmem:[#allocation3 + $0x8] sm:$0x1] %v1148_v22 }
  0xae   : > { %v748_v23 = vpop.permute.xlu1 %747  ;;  %v746_v24 = vpop.permute.xlu0 %745 }
  0xaf   : > { %769 = vst.msk [vmem:[#allocation2 + $0xc] sm:$0xf] %vm765_vm10, %v748_v23  ;;  %768 = vst.msk [vmem:[#allocation2 + $0x8] sm:$0xf] %vm765_vm10, %v746_v24  ;;  %v2688_v24 = vld [vmem:[%s2886_s24 + $0xe8] sm:$0xf] }
  0xb0   : > { %2252 = vrot.lane.b32.xlu0 %v2688_v24, %s2832_s28 }
  0xb2   : > { %v794_v25 = vpop.permute.xlu1 %793  ;;  %v792_v26 = vpop.permute.xlu0 %791 }
  0xb3   : > { %817 = vst.msk [vmem:[#allocation2 + $0x4] sm:$0xf] %vm815_vm11, %v794_v25  ;;  %816 = vst.msk [vmem:[#allocation2] sm:$0xf] %vm815_vm11, %v792_v26  ;;  %v1390_v25 = vshrl.u32 %v1373_v21, 16  ;;  %v1393_v26 = vshll.u32 %v1373_v21, 16 }
  0xb6   : > { %v798_v27 = vpop.permute.xlu1 %797  ;;  %v796_v28 = vpop.permute.xlu0 %795 }
  0xb7   : > { %819 = vst.msk [vmem:[#allocation2 + $0xc] sm:$0xf] %vm815_vm11, %v798_v27  ;;  %818 = vst.msk [vmem:[#allocation2 + $0x8] sm:$0xf] %vm815_vm11, %v796_v28  ;;  %v1156_v27 = vld [vmem:[#allocation3 + $0x20] sm:$0x1] }
  0xb8   : > { %v1188_v28 = vld [vmem:[#allocation3 + $0x24] sm:$0x1] }
  0xba   : > { %v955_v29 = vpop.permute.xlu1 %954  ;;  %v953_v30 = vpop.permute.xlu0 %952 }
  0xbb   : > { %978 = vst.msk [vmem:[#allocation2 + $0x4] sm:$0xf] %vm976_vm12, %v955_v29  ;;  %977 = vst.msk [vmem:[#allocation2] sm:$0xf] %vm976_vm12, %v953_v30  ;;  %v1157_v29 = vsel %vm3196_vm1, 0, %v1156_v27 }
  0xbc   : > { %1158 = vst [vmem:[#allocation3 + $0x20] sm:$0x1] %v1157_v29 }
  0xbe   : > { %v959_v32 = vpop.permute.xlu1 %958  ;;  %v957_v33 = vpop.permute.xlu0 %956 }
  0xbf   : > { %980 = vst.msk [vmem:[#allocation2 + $0xc] sm:$0xf] %vm976_vm12, %v959_v32  ;;  %979 = vst.msk [vmem:[#allocation2 + $0x8] sm:$0xf] %vm976_vm12, %v957_v33  ;;  %v1392_v32 = vrot.slane %v1390_v25, 4  ;;  %v1395_v33 = vrot.slane %v1393_v26, 5 }
  0xc2   : > { %v277_v34 = vpop.permute.xlu1 %276  ;;  %v275_v35 = vpop.permute.xlu0 %274  ;;  %v2795_v36 = vld [vmem:[#allocation2] sm:$0xff]  }
  0xc3   : > { %296 = vst.msk [vmem:[#allocation2 + $0x14] sm:$0xf] %vm290_vm5, %v277_v34  ;;  %295 = vst.msk [vmem:[#allocation2 + $0x10] sm:$0xf] %vm290_vm5, %v275_v35  ;;  %2740 = vmatprep.mubr.msk.bf16.mxu0 %vm1040_vm13, %v2795_v36  ;;  %v1171_v35 = vld [vmem:[#allocation3 + $0x48] sm:$0x1] }
  0xc4   : > { %v1150_v36 = vld [vmem:[#allocation3 + $0x10] sm:$0x1] }
  0xc6   : > { %v281_v37 = vpop.permute.xlu1 %280  ;;  %v279_v38 = vpop.permute.xlu0 %278  ;;  %v2796_v39 = vld [vmem:[#allocation2 + $0x8] sm:$0xff]  }
  0xc7   : > { %298 = vst.msk [vmem:[#allocation2 + $0x1c] sm:$0xf] %vm290_vm5, %v281_v37  ;;  %297 = vst.msk [vmem:[#allocation2 + $0x18] sm:$0xf] %vm290_vm5, %v279_v38  ;;  %2741 = vmatmul.mubr.msk.bf16.vlgmr.msra.gmra.mxu0 %vm1040_vm13, %v2796_v39  ;;  %v1182_v37 = vld [vmem:[#allocation3 + $0x14] sm:$0x1]  ;;  %v1396_v39 = vor.u32 %v1395_v33, %v1392_v32 }
  0xc8   : > { %vm3204_vm5 = vmand %vm1136_vm15, %vm1174_vm3  ;;  %v2689_v38 = vld [vmem:[%s2886_s24 + $0xf0] sm:$0xf]  ;;  %vm2143_vm15 = vcmask 1044352  }
  0xc9   : > { %v1177_v12 = vsel %vm3204_vm5, 0, %v1176_v10  ;;  %v1186_v17 = vsel %vm3204_vm5, 0, %v1185_v14  ;;  %v1204_v18 = vsel %vm3204_vm5, 0, %v1203_v15  ;;  %v1180_v23 = vsel %vm3204_vm5, 0, %v1179_v20  ;;  %2254 = vrot.lane.b32.xlu1 %v2689_v38, %s2832_s28  ;;  %v1357_v14 = vld [vmem:[#allocation3] sm:$0xf] }
  0xca   : > { %v441_v40 = vpop.permute.xlu1 %440  ;;  %v439_v41 = vpop.permute.xlu0 %438  ;;  %1178 = vst [vmem:[#allocation3 + $0x4] sm:$0x1] %v1177_v12  ;;  %1187 = vst [vmem:[#allocation3 + $0x1c] sm:$0x1] %v1186_v17  ;;  %v1189_v30 = vsel %vm3204_vm5, 0, %v1188_v28 }
  0xcb   : > { %460 = vst.msk [vmem:[#allocation2 + $0x14] sm:$0xf] %vm454_vm6, %v441_v40  ;;  %459 = vst.msk [vmem:[#allocation2 + $0x10] sm:$0xf] %vm454_vm6, %v439_v41  ;;  %v1151_v40 = vsel %vm3196_vm1, 0, %v1150_v36  ;;  %v1183_v41 = vsel %vm3204_vm5, 0, %v1182_v37 }
  0xcc   : > { %1205 = vst [vmem:[#allocation3 + $0x4c] sm:$0x1] %v1204_v18  ;;  %1181 = vst [vmem:[#allocation3 + $0xc] sm:$0x1] %v1180_v23  ;;  %v3270_v12 = vld [vmem:[%s3696_s2] ss:$0 sm:$0xff] }
  0xcd   : > { %1190 = vst [vmem:[#allocation3 + $0x24] sm:$0x1] %v1189_v30  ;;  %1152 = vst [vmem:[#allocation3 + $0x10] sm:$0x1] %v1151_v40  ;;  %v1321_v36 = vld [vmem:[#allocation3 + $0x18] sm:$0xf] }
  0xce   : > { %v445_v42 = vpop.permute.xlu1 %444  ;;  %v443_v43 = vpop.permute.xlu0 %442  ;;  %1184 = vst [vmem:[#allocation3 + $0x14] sm:$0x1] %v1183_v41  ;;  %1365 = vst.msk [vmem:[#allocation4] sm:$0xf] %vm1134_vm14, %v1357_v14 }
  0xcf   : > { %462 = vst.msk [vmem:[#allocation2 + $0x1c] sm:$0xf] %vm454_vm6, %v445_v42  ;;  %461 = vst.msk [vmem:[#allocation2 + $0x18] sm:$0xf] %vm454_vm6, %v443_v43  ;;  %v2690_v42 = vld [vmem:[%s2886_s24 + $0xf8] sm:$0xf] }
  0xd0   : > { %2256 = vrot.lane.b32.xlu0 %v2690_v42, %s2832_s28  ;;  %vm1566_vm6 = vcmask 1042432  }
  0xd1   : > { %v1374_v34 = vld [vmem:[#allocation3 + $0x4] sm:$0x1]  ;;  %v1324_v37 = vld [vmem:[#allocation3 + $0x1c] sm:$0x1] }
  0xd2   : > { %v491_v44 = vpop.permute.xlu1 %490  ;;  %v489_v45 = vpop.permute.xlu0 %488  ;;  %v1399_v43 = vshll.u32 %v1374_v34, 16 }
  0xd3   : > { %510 = vst.msk [vmem:[#allocation2 + $0x14] sm:$0xf] %vm504_vm7, %v491_v44  ;;  %509 = vst.msk [vmem:[#allocation2 + $0x10] sm:$0xf] %vm504_vm7, %v489_v45  ;;  %v1172_v44 = vsel %vm3196_vm1, 0, %v1171_v35  ;;  %v1397_v45 = vrot.slane %v1396_v39, 4 }
  0xd4   : > { %1173 = vst [vmem:[#allocation3 + $0x48] sm:$0x1] %v1172_v44  ;;  %v1309_v44 = vld [vmem:[#allocation3 + $0x8] sm:$0xf] }
  0xd6   : > { %v495_v46 = vpop.permute.xlu1 %494  ;;  %v493_v47 = vpop.permute.xlu0 %492 }
  0xd7   : > { %512 = vst.msk [vmem:[#allocation2 + $0x1c] sm:$0xf] %vm504_vm7, %v495_v46  ;;  %511 = vst.msk [vmem:[#allocation2 + $0x18] sm:$0xf] %vm504_vm7, %v493_v47  ;;  %v1401_v46 = vrot.slane %v1399_v43, 5  ;;  %vm1567_vm7 = vcmask 1046532  }
  0xd8   : > { %v2691_v47 = vld [vmem:[%s2886_s24 + $0x100] sm:$0xf] }
  0xd9   : > { %2258 = vrot.lane.b32.xlu1 %v2691_v47, %s2832_s28 }
  0xda   : > { %v541_v48 = vpop.permute.xlu1 %540  ;;  %v539_v49 = vpop.permute.xlu0 %538 }
  0xdb   : > { %560 = vst.msk [vmem:[#allocation2 + $0x14] sm:$0xf] %vm554_vm8, %v541_v48  ;;  %559 = vst.msk [vmem:[#allocation2 + $0x10] sm:$0xf] %vm554_vm8, %v539_v49  ;;  %v1402_v48 = vsel %vm2908_vm2, %v1397_v45, %v1401_v46  ;;  %v1534_v49 = vld [vmem:[#allocation3] sm:$0xe] }
  0xdc   : > { %1501 = vrot.lane.b32.xlu0 %v1402_v48, %s2832_s28  ;;  %v1312_v45 = vld [vmem:[#allocation3 + $0xc] sm:$0x1] }
  0xde   : > { %v545_v50 = vpop.permute.xlu1 %544  ;;  %v543_v51 = vpop.permute.xlu0 %542 }
  0xdf   : > { %562 = vst.msk [vmem:[#allocation2 + $0x1c] sm:$0xf] %vm554_vm8, %v545_v50  ;;  %561 = vst.msk [vmem:[#allocation2 + $0x18] sm:$0xf] %vm554_vm8, %v543_v51  ;;  %v1535_v50 = vld [vmem:[#allocation3 + $0x4] sm:$0x1] }
  0xe0   : > { %v2662_v51 = vrot.slane %v1534_v49, 9 }
  0xe2   : > { %v702_v52 = vpop.permute.xlu1 %701  ;;  %v700_v53 = vpop.permute.xlu0 %699 }
  0xe3   : > { %721 = vst.msk [vmem:[#allocation2 + $0x14] sm:$0xf] %vm715_vm9, %v702_v52  ;;  %720 = vst.msk [vmem:[#allocation2 + $0x10] sm:$0xf] %vm715_vm9, %v700_v53  ;;  %v1571_v52 = vrot.slane %v1535_v50, 5 }
  0xe4   : > { %v2687_v53 = vld [vmem:[%s2886_s24 + $0xe0] sm:$0xf] }
  0xe6   : > { %v706_v54 = vpop.permute.xlu1 %705  ;;  %v704_v55 = vpop.permute.xlu0 %703 }
  0xe7   : > { %723 = vst.msk [vmem:[#allocation2 + $0x1c] sm:$0xf] %vm715_vm9, %v706_v54  ;;  %722 = vst.msk [vmem:[#allocation2 + $0x18] sm:$0xf] %vm715_vm9, %v704_v55  ;;  %v1949_v55 = vld [vmem:[#allocation3 + $0x48] sm:$0xf] }
  0xe8   : > { %vm3241_vm9 = vmor %vm1566_vm6, %vm1567_vm7  ;;  %1972 = vrot.lane.b32.xlu1 %v1949_v55, %s2838_s14 }
  0xe9   : > { %v1572_v54 = vsel %vm3241_vm9, %v2662_v51, %v1571_v52 }
  0xea   : > { %v752_v56 = vpop.permute.xlu1 %751  ;;  %v750_v57 = vpop.permute.xlu0 %749  ;;  %1601 = vrot.lane.b32.xlu0 %v1572_v54, %s2836_s7 }
  0xeb   : > { %771 = vst.msk [vmem:[#allocation2 + $0x14] sm:$0xf] %vm765_vm10, %v752_v56  ;;  %770 = vst.msk [vmem:[#allocation2 + $0x10] sm:$0xf] %vm765_vm10, %v750_v57  ;;  %v1165_v56 = vld [vmem:[#allocation3 + $0x38] sm:$0x1] }
  0xec   : > { %v1197_v57 = vld [vmem:[#allocation3 + $0x3c] sm:$0x1] }
  0xee   : > { %v756_v58 = vpop.permute.xlu1 %755  ;;  %v754_v59 = vpop.permute.xlu0 %753 }
  0xef   : > { %773 = vst.msk [vmem:[#allocation2 + $0x1c] sm:$0xf] %vm765_vm10, %v756_v58  ;;  %772 = vst.msk [vmem:[#allocation2 + $0x18] sm:$0xf] %vm765_vm10, %v754_v59  ;;  %v1166_v58 = vsel %vm3196_vm1, 0, %v1165_v56  ;;  %v1198_v59 = vsel %vm3204_vm5, 0, %v1197_v57 }
  0xf0   : > { %1167 = vst [vmem:[#allocation3 + $0x38] sm:$0x1] %v1166_v58  ;;  %1199 = vst [vmem:[#allocation3 + $0x3c] sm:$0x1] %v1198_v59  ;;  %vm1525_vm10 = vcmask 257152  }
  0xf1   : > { %v1327_v57 = vld [vmem:[#allocation3 + $0x20] sm:$0xf]  ;;  %v1330_v58 = vld [vmem:[#allocation3 + $0x24] sm:$0x1] }
  0xf2   : > { %v802_v60 = vpop.permute.xlu1 %801  ;;  %v800_v61 = vpop.permute.xlu0 %799 }
  0xf3   : > { %821 = vst.msk [vmem:[#allocation2 + $0x14] sm:$0xf] %vm815_vm11, %v802_v60  ;;  %820 = vst.msk [vmem:[#allocation2 + $0x10] sm:$0xf] %vm815_vm11, %v800_v61  ;;  %v1159_v60 = vld [vmem:[#allocation3 + $0x28] sm:$0x1] }
  0xf4   : > { %v1191_v61 = vld [vmem:[#allocation3 + $0x2c] sm:$0x1] }
  0xf6   : > { %v806_v62 = vpop.permute.xlu1 %805  ;;  %v804_v63 = vpop.permute.xlu0 %803 }
  0xf7   : > { %823 = vst.msk [vmem:[#allocation2 + $0x1c] sm:$0xf] %vm815_vm11, %v806_v62  ;;  %822 = vst.msk [vmem:[#allocation2 + $0x18] sm:$0xf] %vm815_vm11, %v804_v63  ;;  %v1160_v62 = vsel %vm3196_vm1, 0, %v1159_v60  ;;  %v1192_v63 = vsel %vm3204_vm5, 0, %v1191_v61 }
  0xf8   : > { %1161 = vst [vmem:[#allocation3 + $0x28] sm:$0x1] %v1160_v62  ;;  %1193 = vst [vmem:[#allocation3 + $0x2c] sm:$0x1] %v1192_v63  ;;  %vm1625_vm11 = vcmask 388352  }
  0xf9   : > { %v1315_v63 = vld [vmem:[#allocation3 + $0x10] sm:$0xf] }
  0xfa   : > { %v963_v0 = vpop.permute.xlu1 %962  ;;  %v961_v1 = vpop.permute.xlu0 %960 }
  0xfb   : > { %982 = vst.msk [vmem:[#allocation2 + $0x14] sm:$0xf] %vm976_vm12, %v963_v0  ;;  %981 = vst.msk [vmem:[#allocation2 + $0x10] sm:$0xf] %vm976_vm12, %v961_v1  ;;  %v1168_v0 = vld [vmem:[#allocation3 + $0x40] sm:$0x1] }
  0xfc   : > { %v1200_v1 = vld [vmem:[#allocation3 + $0x44] sm:$0x1] }
  0xfe   : > { %v967_v3 = vpop.permute.xlu1 %966  ;;  %v965_v4 = vpop.permute.xlu0 %964 }
  0xff   : > { %984 = vst.msk [vmem:[#allocation2 + $0x1c] sm:$0xf] %vm976_vm12, %v967_v3  ;;  %983 = vst.msk [vmem:[#allocation2 + $0x18] sm:$0xf] %vm976_vm12, %v965_v4  ;;  %v1169_v3 = vsel %vm3196_vm1, 0, %v1168_v0  ;;  %v1201_v4 = vsel %vm3204_vm5, 0, %v1200_v1 }
 0x100   : > { %1170 = vst [vmem:[#allocation3 + $0x40] sm:$0x1] %v1169_v3  ;;  %1202 = vst [vmem:[#allocation3 + $0x44] sm:$0x1] %v1201_v4  ;;  %v1318_v0 = vld [vmem:[#allocation3 + $0x14] sm:$0x1] }
 0x101   : > { %vm3283_vm12 = vmand %vm1134_vm14, %vm1174_vm3 }
 0x102   : > { %v2797_v5 = vld [vmem:[#allocation2 + $0x10] sm:$0xff]  }
 0x103   : > { %2744 = vmatprep.mubr.msk.bf16.mxu0 %vm1040_vm13, %v2797_v5  ;;  %v1162_v5 = vld [vmem:[#allocation3 + $0x30] sm:$0x1] }
 0x104   : > { %v1163_v8 = vsel %vm3196_vm1, 0, %v1162_v5 }
 0x105   : > { %1164 = vst [vmem:[#allocation3 + $0x30] sm:$0x1] %v1163_v8 }
 0x106   : > { %v2798_v9 = vld [vmem:[#allocation2 + $0x18] sm:$0xff]  }
 0x107   : > { %2745 = vmatmul.mubr.msk.bf16.gmra.mxu0 %vm1040_vm13, %v2798_v9  ;;  %v1195_v9 = vsel %vm3204_vm5, 0, %v1194_v7  ;;  %vm1674_vm13 = vcmask 519552  }
 0x108   : > { %1196 = vst [vmem:[#allocation3 + $0x34] sm:$0x1] %v1195_v9 }
 0x122   : > { %v3265_v10 = vpop.permute.xlu0 %2252 }
 0x142   : > { %v3272_v13 = vpop.permute.xlu0 %2256 }
 0x14e   : > { %v1502_v17 = vpop.permute.xlu0 %1501 }
 0x14f   : > { %1526 = vst.msk [vmem:[#allocation4] sm:$0xf] %vm1525_vm10, %v1502_v17 }
 0x15c   : > { %v1602_v28 = vpop.permute.xlu0 %1601 }
 0x15d   : > { %1626 = vst.msk [vmem:[#allocation4] sm:$0xf] %vm1625_vm11, %v1602_v28 }
 0x187   : > { %v2742_v15 = vpop.f32.mrf.mxu0 }
 0x188   : > { %v1100_v16 = vadd.f32 %v2742_v15, %v3270_v12 }
 0x189   : > { %v1091_v11 = vpop.f32.mrf.mxu0 }
 0x18a   : > { %v1124_v18 = vmax.f32 %v1100_v16, 0.0  ;;  %v1092_v19 = vadd.f32 %v3270_v12, %v1091_v11 }
 0x18b   : > { %v2743_v20 = vpop.f32.mrf.mxu0 }
 0x18c   : > { %v2721_v21 = vpack.c.bf16 %v1124_v18, %v1124_v18  ;;  %v1122_v22 = vmax.f32 %v1092_v19, 0.0  ;;  %v1103_v23 = vadd.f32 %v2743_v20, %v3270_v12 }
 0x18d   : > { %v1094_v24 = vpop.f32.mrf.mxu0 }
 0x18e   : > { %v1243_v25 = vshrl.u32 %v2721_v21, 16  ;;  %v2719_v26 = vpack.c.bf16 %v1122_v22, %v1122_v22  ;;  %v1125_v27 = vmax.f32 %v1103_v23, 0.0  ;;  %v1095_v29 = vadd.f32 %v3270_v12, %v1094_v24 }
 0x18f   : > { %v1246_v32 = vshll.u32 %v2721_v21, 16 }
 0x190   : > { %v1245_v30 = vrot.slane %v1243_v25, 7  ;;  %v1227_v33 = vshrl.u32 %v2719_v26, 16  ;;  %v2722_v34 = vpack.c.bf16 %v1125_v27, %v1125_v27  ;;  %v1230_v38 = vshll.u32 %v2719_v26, 16 }
 0x191   : > { %v1123_v39 = vmax.f32 %v1095_v29, 0.0 }
 0x192   : > { %v1248_v40 = vor.u32 %v1246_v32, %v1245_v30  ;;  %v1249_v41 = vrot.slane %v1245_v30, 4  ;;  %v1229_v42 = vrot.slane %v1227_v33, 7  ;;  %v1251_v43 = vshrl.u32 %v2722_v34, 16 }
 0x193   : > { %v2720_v46 = vpack.c.bf16 %v1123_v39, %v1123_v39  ;;  %v1254_v52 = vshll.u32 %v2722_v34, 16 }
 0x194   : > { %v1322_v47 = vsel %vm3283_vm12, %v1248_v40, %v1321_v36  ;;  %v1325_v48 = vsel %vm3196_vm1, %v1249_v41, %v1324_v37  ;;  %v1232_v49 = vor.u32 %v1230_v38, %v1229_v42  ;;  %v1233_v50 = vrot.slane %v1229_v42, 4 }
 0x195   : > { %1323 = vst [vmem:[#allocation3 + $0x18] sm:$0xf] %v1322_v47  ;;  %1326 = vst [vmem:[#allocation3 + $0x1c] sm:$0x1] %v1325_v48  ;;  %v1253_v51 = vrot.slane %v1251_v43, 7  ;;  %v1235_v54 = vshrl.u32 %v2720_v46, 16 }
 0x196   : > { %v1310_v55 = vsel %vm3283_vm12, %v1232_v49, %v1309_v44  ;;  %v1313_v56 = vsel %vm3196_vm1, %v1233_v50, %v1312_v45  ;;  %v1238_v62 = vshll.u32 %v2720_v46, 16 }
 0x197   : > { %1311 = vst [vmem:[#allocation3 + $0x8] sm:$0xf] %v1310_v55  ;;  %1314 = vst [vmem:[#allocation3 + $0xc] sm:$0x1] %v1313_v56  ;;  %v1256_v59 = vor.u32 %v1254_v52, %v1253_v51  ;;  %v1257_v60 = vrot.slane %v1253_v51, 4  ;;  %v1237_v61 = vrot.slane %v1235_v54, 7 }
 0x199   : > { %v1328_v1 = vsel %vm3283_vm12, %v1256_v59, %v1327_v57  ;;  %v1331_v3 = vsel %vm3196_vm1, %v1257_v60, %v1330_v58  ;;  %v1240_v4 = vor.u32 %v1238_v62, %v1237_v61  ;;  %v1241_v5 = vrot.slane %v1237_v61, 4 }
 0x19a   : > { %1329 = vst [vmem:[#allocation3 + $0x20] sm:$0xf] %v1328_v1  ;;  %1332 = vst [vmem:[#allocation3 + $0x24] sm:$0x1] %v1331_v3 }
 0x19b   : > { %v1316_v7 = vsel %vm3283_vm12, %v1240_v4, %v1315_v63  ;;  %v1319_v8 = vsel %vm3196_vm1, %v1241_v5, %v1318_v0 }
 0x19c   : > { %1317 = vst [vmem:[#allocation3 + $0x10] sm:$0xf] %v1316_v7  ;;  %1320 = vst [vmem:[#allocation3 + $0x14] sm:$0x1] %v1319_v8  ;;  %v1943_v9 = vld [vmem:[#allocation3 + $0x18] sm:$0xf] }
 0x19d   : > { %v1636_v14 = vld [vmem:[#allocation3 + $0x18] sm:$0xf]  ;;  %1960 = vrot.lane.b32.xlu1 %v1943_v9, %s2838_s14  ;;  %v1541_v16 = vld [vmem:[#allocation3 + $0x1c] sm:$0x1] }
 0x19e   : > { %v1540_v15 = vld [vmem:[#allocation3 + $0x18] sm:$0xe]  ;;  %1654 = vrot.lane.b32.xlu0 %v1636_v14, %s2839_s17  ;;  %v1583_v18 = vrot.slane %v1541_v16, 5  ;;  %v1849_v19 = vld [vmem:[#allocation3 + $0x1c] sm:$0x1] }
 0x19f   : > { %v2665_v11 = vrot.slane %v1540_v15, 9  ;;  %v1848_v17 = vld [vmem:[#allocation3 + $0x18] sm:$0xe]  ;;  %v1634_v21 = vld [vmem:[#allocation3 + $0x8] sm:$0xf]  ;;  %v1886_v23 = vrot.slane %v1849_v19, 5 }
 0x1a0   : > { %v2672_v22 = vrot.slane %v1848_v17, 9  ;;  %v1536_v24 = vld [vmem:[#allocation3 + $0x8] sm:$0xe]  ;;  %v1537_v25 = vld [vmem:[#allocation3 + $0xc] sm:$0x1] }
 0x1a1   : > { %v1584_v20 = vsel %vm3241_vm9, %v2665_v11, %v1583_v18  ;;  %v1637_v26 = vld [vmem:[#allocation3 + $0x20] sm:$0xf]  ;;  %v2663_v28 = vrot.slane %v1536_v24, 9  ;;  %v1575_v29 = vrot.slane %v1537_v25, 5  ;;  %v1844_v30 = vld [vmem:[#allocation3 + $0x8] sm:$0xe] }
 0x1a2   : > { %1607 = vrot.lane.b32.xlu1 %v1584_v20, %s2836_s7  ;;  %1650 = vrot.lane.b32.xlu0 %v1634_v21, %s2839_s17  ;;  %v1887_v27 = vsel %vm3241_vm9, %v2672_v22, %v1886_v23  ;;  %v1845_v32 = vld [vmem:[#allocation3 + $0xc] sm:$0x1]  ;;  %v1944_v33 = vld [vmem:[#allocation3 + $0x20] sm:$0xf]  ;;  %v2670_v36 = vrot.slane %v1844_v30, 9 }
 0x1a3   : > { %v1576_v34 = vsel %vm3241_vm9, %v2663_v28, %v1575_v29  ;;  %v1878_v37 = vrot.slane %v1845_v32, 5  ;;  %v1850_v38 = vld [vmem:[#allocation3 + $0x20] sm:$0xe]  ;;  %v1851_v39 = vld [vmem:[#allocation3 + $0x24] sm:$0x1] }
 0x1a4   : > { %v1635_v41 = vld [vmem:[#allocation3 + $0x10] sm:$0xf]  ;;  %v2673_v42 = vrot.slane %v1850_v38, 9  ;;  %v1890_v43 = vrot.slane %v1851_v39, 5  ;;  %v1542_v44 = vld [vmem:[#allocation3 + $0x20] sm:$0xe] }
 0x1a5   : > { %v1879_v40 = vsel %vm3241_vm9, %v2670_v36, %v1878_v37  ;;  %v1543_v45 = vld [vmem:[#allocation3 + $0x24] sm:$0x1]  ;;  %v1942_v46 = vld [vmem:[#allocation3 + $0x10] sm:$0xf]  ;;  %v2666_v48 = vrot.slane %v1542_v44, 9 }
 0x1a6   : > { %1656 = vrot.lane.b32.xlu1 %v1637_v26, %s2839_s17  ;;  %1912 = vrot.lane.b32.xlu0 %v1887_v27, %s2840_s20  ;;  %v1891_v47 = vsel %vm3241_vm9, %v2673_v42, %v1890_v43  ;;  %v1587_v49 = vrot.slane %v1543_v45, 5  ;;  %v2156_v51 = vld [vmem:[#allocation3 + $0x20] sm:$0xe]  ;;  %v2157_v52 = vld [vmem:[#allocation3 + $0x24] sm:$0x1] }
 0x1a7   : > { %v2680_v54 = vrot.slane %v2156_v51, 9  ;;  %v2194_v55 = vrot.slane %v2157_v52, 5  ;;  %v1360_v57 = vld [vmem:[#allocation3 + $0x18] sm:$0xf]  ;;  %v1358_v58 = vld [vmem:[#allocation3 + $0x8] sm:$0xf] }
 0x1a8   : > { %v1588_v50 = vsel %vm3241_vm9, %v2666_v48, %v1587_v49  ;;  %1368 = vst.msk [vmem:[#allocation4 + $0x18] sm:$0xf] %vm1134_vm14, %v1360_v57  ;;  %v1361_v59 = vld [vmem:[#allocation3 + $0x20] sm:$0xf]  ;;  %1366 = vst.msk [vmem:[#allocation4 + $0x8] sm:$0xf] %vm1134_vm14, %v1358_v58 }
 0x1a9   : > { %v2195_v56 = vsel %vm3241_vm9, %v2680_v54, %v2194_v55  ;;  %1369 = vst.msk [vmem:[#allocation4 + $0x20] sm:$0xf] %vm1134_vm14, %v1361_v59  ;;  %v1359_v60 = vld [vmem:[#allocation3 + $0x10] sm:$0xf]  ;;  %v2153_v62 = vld [vmem:[#allocation3 + $0x14] sm:$0x1] }
 0x1aa   : > { %1962 = vrot.lane.b32.xlu0 %v1944_v33, %s2838_s14  ;;  %1603 = vrot.lane.b32.xlu1 %v1576_v34, %s2836_s7  ;;  %2226 = vst.msk [vmem:[#allocation4 + $0x14] sm:$0xf] %vm1134_vm14, %v2195_v56  ;;  %v2152_v61 = vld [vmem:[#allocation3 + $0x10] sm:$0xe]  ;;  %1367 = vst.msk [vmem:[#allocation4 + $0x10] sm:$0xf] %vm1134_vm14, %v1359_v60 }
 0x1ab   : > { %2274 = vst.msk [vmem:[#allocation4 + $0x14] sm:$0xf] %vm554_vm8, %v3265_v10  ;;  %v2678_v63 = vrot.slane %v2152_v61, 9  ;;  %v2154_v0 = vld [vmem:[#allocation3 + $0x18] sm:$0xe]  ;;  %v2186_v1 = vrot.slane %v2153_v62, 5 }
 0x1ac   : > { %v2155_v3 = vld [vmem:[#allocation3 + $0x1c] sm:$0x1]  ;;  %v2679_v4 = vrot.slane %v2154_v0, 9  ;;  %v1379_v20 = vld [vmem:[#allocation3 + $0x18] sm:$0xf] }
 0x1ad   : > { %v2190_v10 = vrot.slane %v2155_v3, 5  ;;  %v2187_v5 = vsel %vm3241_vm9, %v2678_v63, %v2186_v1  ;;  %v1687_v21 = vld [vmem:[#allocation3 + $0x18] sm:$0xf]  ;;  %v1432_v28 = vshrl.u32 %v1379_v20, 16  ;;  %v1435_v29 = vshll.u32 %v1379_v20, 16 }
 0x1ae   : > { %1908 = vrot.lane.b32.xlu0 %v1879_v40, %s2840_s20  ;;  %1652 = vrot.lane.b32.xlu1 %v1635_v41, %s2839_s17  ;;  %2224 = vst.msk [vmem:[#allocation4 + $0x4] sm:$0xf] %vm1134_vm14, %v2187_v5  ;;  %v1345_v26 = vld [vmem:[#allocation3 + $0x38] sm:$0xf]  ;;  %v1728_v30 = vshrl.u32 %v1687_v21, 16  ;;  %v1731_v41 = vshll.u32 %v1687_v21, 16 }
 0x1af   : > { %v2191_v8 = vsel %vm3241_vm9, %v2679_v4, %v2190_v10  ;;  %v1348_v34 = vld [vmem:[#allocation3 + $0x3c] sm:$0x1]  ;;  %v1333_v39 = vld [vmem:[#allocation3 + $0x28] sm:$0xf]  ;;  %v1336_v45 = vld [vmem:[#allocation3 + $0x2c] sm:$0x1] }
 0x1b0   : > { %2225 = vst.msk [vmem:[#allocation4 + $0xc] sm:$0xf] %vm1134_vm14, %v2191_v8  ;;  %v1434_v48 = vrot.slane %v1432_v28, 4  ;;  %v3347_v49 = vrot.slane %v1728_v30, 4  ;;  %v1351_v56 = vld [vmem:[#allocation3 + $0x40] sm:$0xf] }
 0x1b1   : > { %v1538_v60 = vld [vmem:[#allocation3 + $0x10] sm:$0xe]  ;;  %v1733_v61 = vrot.slane %v1731_v41, 5  ;;  %v1354_v0 = vld [vmem:[#allocation3 + $0x44] sm:$0x1] }
 0x1b2   : > { %1958 = vrot.lane.b32.xlu0 %v1942_v46, %s2838_s14  ;;  %1914 = vrot.lane.b32.xlu1 %v1891_v47, %s2840_s20  ;;  %v1380_v1 = vld [vmem:[#allocation3 + $0x1c] sm:$0x1]  ;;  %v1539_v21 = vld [vmem:[#allocation3 + $0x14] sm:$0x1]  ;;  %v1846_v30 = vld [vmem:[#allocation3 + $0x10] sm:$0xe] }
 0x1b3   : > { %v2671_v6 = vrot.slane %v1846_v30, 9 }
 0x1b6   : > { %1609 = vrot.lane.b32.xlu0 %v1588_v50, %s2836_s7  ;;  %v1993_v50 = vld [vmem:[#allocation3 + $0x18] sm:$0xf] }
 0x1b7   : > { %v2022_v3 = vshrl.u32 %v1993_v50, 16  ;;  %v2025_v4 = vshll.u32 %v1993_v50, 16 }
 0x1c7   : > { %v2746_v7 = vpop.f32.mrf.mxu0 }
 0x1c8   : > { %v1116_v9 = vadd.f32 %v2746_v7, %v3270_v12 }
 0x1c9   : > { %v1107_v14 = vpop.f32.mrf.mxu0 }
 0x1ca   : > { %v1128_v15 = vmax.f32 %v1116_v9, 0.0  ;;  %v1108_v16 = vadd.f32 %v3270_v12, %v1107_v14  ;;  %v1683_v9 = vld [vmem:[#allocation3 + $0x8] sm:$0xf]  ;;  %v1339_v14 = vld [vmem:[#allocation3 + $0x30] sm:$0xf] }
 0x1cb   : > { %v2747_v11 = vpop.f32.mrf.mxu0 }
 0x1cc   : > { %v2725_v17 = vpack.c.bf16 %v1128_v15, %v1128_v15  ;;  %v1126_v18 = vmax.f32 %v1108_v16, 0.0  ;;  %v1119_v19 = vadd.f32 %v2747_v11, %v3270_v12  ;;  %v1342_v15 = vld [vmem:[#allocation3 + $0x34] sm:$0x1]  ;;  %v2664_v16 = vrot.slane %v1538_v60, 9 }
 0x1cd   : > { %v1110_v22 = vpop.f32.mrf.mxu0 }
 0x1ce   : > { %v1275_v23 = vshrl.u32 %v2725_v17, 16  ;;  %v2723_v24 = vpack.c.bf16 %v1126_v18, %v1126_v18  ;;  %v1129_v25 = vmax.f32 %v1119_v19, 0.0  ;;  %v1111_v27 = vadd.f32 %v3270_v12, %v1110_v22 }
 0x1cf   : > { %v1278_v33 = vshll.u32 %v2725_v17, 16  ;;  %v1437_v12 = vrot.slane %v1435_v29, 5  ;;  %v1441_v22 = vshll.u32 %v1380_v1, 16  ;;  %v1734_v29 = vor.u32 %v1733_v61, %v3347_v49  ;;  %v2255_v61 = vpop.permute.xlu1 %2254 }
 0x1d0   : > { %v1277_v32 = vrot.slane %v1275_v23, 7  ;;  %v1259_v36 = vshrl.u32 %v2723_v24, 16  ;;  %v2726_v37 = vpack.c.bf16 %v1129_v25, %v1129_v25  ;;  %v1262_v38 = vshll.u32 %v2723_v24, 16  ;;  %v1688_v23 = vld [vmem:[#allocation3 + $0x1c] sm:$0x1] }
 0x1d1   : > { %v1127_v40 = vmax.f32 %v1111_v27, 0.0  ;;  %v1438_v11 = vor.u32 %v1437_v12, %v1434_v48  ;;  %v2024_v24 = vrot.slane %v2022_v3, 4  ;;  %v2027_v25 = vrot.slane %v2025_v4, 5 }
 0x1d2   : > { %v1280_v42 = vor.u32 %v1278_v33, %v1277_v32  ;;  %v1281_v43 = vrot.slane %v1277_v32, 4  ;;  %v1261_v44 = vrot.slane %v1259_v36, 7  ;;  %v1283_v46 = vshrl.u32 %v2726_v37, 16  ;;  %v1847_v32 = vld [vmem:[#allocation3 + $0x14] sm:$0x1] }
 0x1d3   : > { %v2724_v47 = vpack.c.bf16 %v1127_v40, %v1127_v40  ;;  %v1286_v58 = vshll.u32 %v2726_v37, 16  ;;  %v1703_v33 = vshll.u32 %v1683_v9, 16  ;;  %v1579_v37 = vrot.slane %v1539_v21, 5  ;;  %v1381_v21 = vld [vmem:[#allocation3 + $0x20] sm:$0xf]  ;;  %v2259_v30 = vpop.permute.xlu1 %2258 }
 0x1d4   : > { %v1346_v51 = vsel %vm3283_vm12, %v1280_v42, %v1345_v26  ;;  %v1349_v52 = vsel %vm3196_vm1, %v1281_v43, %v1348_v34  ;;  %v1264_v54 = vor.u32 %v1262_v38, %v1261_v44  ;;  %v1265_v55 = vrot.slane %v1261_v44, 4  ;;  %v1994_v42 = vld [vmem:[#allocation3 + $0x1c] sm:$0x1] }
 0x1d5   : > { %1347 = vst [vmem:[#allocation3 + $0x38] sm:$0xf] %v1346_v51  ;;  %1350 = vst [vmem:[#allocation3 + $0x3c] sm:$0x1] %v1349_v52  ;;  %v1285_v57 = vrot.slane %v1283_v46, 7  ;;  %v1267_v59 = vshrl.u32 %v2724_v47, 16  ;;  %v2028_v43 = vor.u32 %v2027_v25, %v2024_v24 }
 0x1d6   : > { %v1334_v62 = vsel %vm3283_vm12, %v1264_v54, %v1333_v39  ;;  %v1337_v63 = vsel %vm3196_vm1, %v1265_v55, %v1336_v45  ;;  %v1270_v8 = vshll.u32 %v2724_v47, 16  ;;  %v1700_v26 = vshrl.u32 %v1683_v9, 16  ;;  %v1375_v39 = vld [vmem:[#allocation3 + $0x8] sm:$0xf]  ;;  %v1684_v52 = vld [vmem:[#allocation3 + $0xc] sm:$0x1] }
 0x1d7   : > { %1335 = vst [vmem:[#allocation3 + $0x28] sm:$0xf] %v1334_v62  ;;  %1338 = vst [vmem:[#allocation3 + $0x2c] sm:$0x1] %v1337_v63  ;;  %v1288_v10 = vor.u32 %v1286_v58, %v1285_v57  ;;  %v1289_v5 = vrot.slane %v1285_v57, 4  ;;  %v1269_v7 = vrot.slane %v1267_v59, 7  ;;  %v1580_v47 = vsel %vm3241_vm9, %v2664_v16, %v1579_v37 }
 0x1d8   : > { %v1439_v38 = vrot.slane %v1438_v11, 4  ;;  %v1737_v35 = vshll.u32 %v1688_v23, 16  ;;  %v1443_v40 = vrot.slane %v1441_v22, 5  ;;  %v1882_v41 = vrot.slane %v1847_v32, 5  ;;  %v1995_v54 = vld [vmem:[#allocation3 + $0x20] sm:$0xf] }
 0x1d9   : > { %v1352_v17 = vsel %vm3283_vm12, %v1288_v10, %v1351_v56  ;;  %v1355_v18 = vsel %vm3196_vm1, %v1289_v5, %v1354_v0  ;;  %v1272_v19 = vor.u32 %v1270_v8, %v1269_v7  ;;  %v1273_v20 = vrot.slane %v1269_v7, 4 }
 0x1da   : > { %1353 = vst [vmem:[#allocation3 + $0x40] sm:$0xf] %v1352_v17  ;;  %1356 = vst [vmem:[#allocation3 + $0x44] sm:$0x1] %v1355_v18  ;;  %v1735_v44 = vrot.slane %v1734_v29, 4  ;;  %v1702_v45 = vrot.slane %v1700_v26, 4  ;;  %v1444_v48 = vsel %vm2908_vm2, %v1439_v38, %v1443_v40  ;;  %v1883_v55 = vsel %vm3241_vm9, %v2671_v6, %v1882_v41 }
 0x1db   : > { %v1340_v27 = vsel %vm3283_vm12, %v1272_v19, %v1339_v14  ;;  %v1343_v28 = vsel %vm3196_vm1, %v1273_v20, %v1342_v15  ;;  %v1705_v46 = vrot.slane %v1703_v33, 5  ;;  %v1404_v12 = vshrl.u32 %v1375_v39, 16  ;;  %v1376_v19 = vld [vmem:[#allocation3 + $0xc] sm:$0x1]  ;;  %v1689_v26 = vld [vmem:[#allocation3 + $0x20] sm:$0xf] }
 0x1dc   : > { %1341 = vst [vmem:[#allocation3 + $0x30] sm:$0xf] %v1340_v27  ;;  %1344 = vst [vmem:[#allocation3 + $0x34] sm:$0x1] %v1343_v28  ;;  %v1640_v34 = vld [vmem:[#allocation3 + $0x38] sm:$0xf] }
 0x1dd   : > { %v1947_v36 = vld [vmem:[#allocation3 + $0x38] sm:$0xf]  ;;  %1662 = vrot.lane.b32.xlu0 %v1640_v34, %s2839_s17  ;;  %v1407_v49 = vshll.u32 %v1375_v39, 16  ;;  %v1739_v50 = vrot.slane %v1737_v35, 5  ;;  %v2031_v51 = vshll.u32 %v1994_v42, 16  ;;  %v2029_v56 = vrot.slane %v2028_v43, 4 }
 0x1de   : > { %1968 = vrot.lane.b32.xlu1 %v1947_v36, %s2838_s14  ;;  %v2158_v57 = vld [vmem:[#allocation3 + $0x28] sm:$0xe]  ;;  %v2159_v58 = vld [vmem:[#allocation3 + $0x2c] sm:$0x1]  ;;  %v1706_v60 = vor.u32 %v1705_v46, %v1702_v45  ;;  %v1406_v3 = vrot.slane %v1404_v12, 4  ;;  %v1709_v8 = vshll.u32 %v1684_v52, 16 }
 0x1df   : > { %v1740_v59 = vsel %vm2908_vm2, %v1735_v44, %v1739_v50  ;;  %v2681_v62 = vrot.slane %v2158_v57, 9  ;;  %v2198_v63 = vrot.slane %v2159_v58, 5  ;;  %v1409_v4 = vrot.slane %v1407_v49, 5  ;;  %v2162_v14 = vld [vmem:[#allocation3 + $0x38] sm:$0xe] }
 0x1e0   : > { %v2033_v7 = vrot.slane %v2031_v51, 5  ;;  %v2163_v15 = vld [vmem:[#allocation3 + $0x3c] sm:$0x1]  ;;  %v2036_v16 = vshrl.u32 %v1995_v54, 16  ;;  %v2683_v17 = vrot.slane %v2162_v14, 9  ;;  %v2039_v20 = vshll.u32 %v1995_v54, 16 }
 0x1e1   : > { %1605 = vrot.lane.b32.xlu0 %v1580_v47, %s2836_s7  ;;  %v2199_v9 = vsel %vm3241_vm9, %v2681_v62, %v2198_v63  ;;  %v2206_v18 = vrot.slane %v2163_v15, 5  ;;  %v1638_v22 = vld [vmem:[#allocation3 + $0x28] sm:$0xf]  ;;  %v1707_v24 = vrot.slane %v1706_v60, 4  ;;  %v1410_v25 = vor.u32 %v1409_v4, %v1406_v3  ;;  %v1856_v28 = vld [vmem:[#allocation3 + $0x38] sm:$0xe] }
 0x1e2   : > { %1507 = vrot.lane.b32.xlu1 %v1444_v48, %s2832_s28  ;;  %2227 = vst.msk [vmem:[#allocation4 + $0x1c] sm:$0xf] %vm1134_vm14, %v2199_v9  ;;  %v2034_v23 = vsel %vm2908_vm2, %v2029_v56, %v2033_v7  ;;  %v1857_v29 = vld [vmem:[#allocation3 + $0x3c] sm:$0x1]  ;;  %v1711_v32 = vrot.slane %v1709_v8, 5  ;;  %v1413_v33 = vshll.u32 %v1376_v19, 16 }
 0x1e3   : > { %v2160_v0 = vld [vmem:[#allocation3 + $0x30] sm:$0xe]  ;;  %v2161_v1 = vld [vmem:[#allocation3 + $0x34] sm:$0x1]  ;;  %2275 = vst.msk [vmem:[#allocation4 + $0x1c] sm:$0xf] %vm554_vm8, %v2255_v61  ;;  %v2207_v27 = vsel %vm3241_vm9, %v2683_v17, %v2206_v18 }
 0x1e4   : > { %v2682_v10 = vrot.slane %v2160_v0, 9  ;;  %v2202_v5 = vrot.slane %v2161_v1, 5  ;;  %2229 = vst.msk [vmem:[#allocation4 + $0x2c] sm:$0xf] %vm1134_vm14, %v2207_v27  ;;  %v2038_v34 = vrot.slane %v2036_v16, 4  ;;  %v1446_v36 = vshrl.u32 %v1381_v21, 16 }
 0x1e5   : > { %1815 = vrot.lane.b32.xlu0 %v1740_v59, %s2841_s21  ;;  %2277 = vst.msk [vmem:[#allocation4 + $0x2c] sm:$0xf] %vm554_vm8, %v2259_v30  ;;  %v1449_v37 = vshll.u32 %v1381_v21, 16  ;;  %v1742_v38 = vshrl.u32 %v1689_v26, 16  ;;  %v1745_v35 = vshll.u32 %v1689_v26, 16  ;;  %v1712_v39 = vsel %vm2908_vm2, %v1707_v24, %v1711_v32  ;;  %v2799_v15 = vld [vmem:[%s3697_s3 + $0x38] sm:$0xff]  }
 0x1e6   : > { %1910 = vrot.lane.b32.xlu1 %v1883_v55, %s2840_s20  ;;  %v2203_v11 = vsel %vm3241_vm9, %v2682_v10, %v2202_v5  ;;  %v1945_v40 = vld [vmem:[#allocation3 + $0x28] sm:$0xf]  ;;  %v2676_v6 = vrot.slane %v1856_v28, 9  ;;  %v1902_v41 = vrot.slane %v1857_v29, 5  ;;  %v1411_v42 = vrot.slane %v1410_v25, 4  ;;  %2758 = vmatpush1.bf16.msra.mxu1 %v2799_v15 }
 0x1e7   : > { %2228 = vst.msk [vmem:[#allocation4 + $0x24] sm:$0xf] %vm1134_vm14, %v2203_v11  ;;  %v1548_v43 = vld [vmem:[#allocation3 + $0x38] sm:$0xe]  ;;  %v1549_v44 = vld [vmem:[#allocation3 + $0x3c] sm:$0x1]  ;;  %2424 = vmatpush1.bf16.msra.mxu0 %v2799_v15  ;;  %2749 = vmatprep.subr.bf16.mxu1 %v2837_v2 }
 0x1e8   : > { %2276 = vst.msk [vmem:[#allocation4 + $0x24] sm:$0xf] %vm554_vm8, %v3272_v13  ;;  %v2041_v13 = vrot.slane %v2039_v20, 5  ;;  %v1415_v45 = vrot.slane %v1413_v33, 5  ;;  %v1996_v46 = vld [vmem:[#allocation3 + $0x24] sm:$0x1]  ;;  %v1903_v51 = vsel %vm3241_vm9, %v2676_v6, %v1902_v41  ;;  %2425 = vmatprep.subr.bf16.mxu0 %v2837_v2 }
 0x1e9   : > { %1658 = vrot.lane.b32.xlu0 %v1638_v22, %s2839_s17  ;;  %v1448_v47 = vrot.slane %v1446_v36, 4  ;;  %v1451_v12 = vrot.slane %v1449_v37, 5  ;;  %v1744_v49 = vrot.slane %v1742_v38, 4  ;;  %v1747_v50 = vrot.slane %v1745_v35, 5  ;;  %v1377_v56 = vld [vmem:[#allocation3 + $0x10] sm:$0xf] }
 0x1ea   : > { %2121 = vrot.lane.b32.xlu1 %v2034_v23, %s2842_s22  ;;  %v2042_v48 = vor.u32 %v2041_v13, %v2038_v34  ;;  %v1416_v52 = vsel %vm2908_vm2, %v1411_v42, %v1415_v45  ;;  %v2669_v54 = vrot.slane %v1548_v43, 9  ;;  %v1599_v55 = vrot.slane %v1549_v44, 5  ;;  %v1382_v58 = vld [vmem:[#allocation3 + $0x24] sm:$0x1]  ;;  %v1685_v60 = vld [vmem:[#allocation3 + $0x10] sm:$0xf] }
 0x1eb   : > { %v2045_v57 = vshll.u32 %v1996_v46, 16  ;;  %v1690_v59 = vld [vmem:[#allocation3 + $0x24] sm:$0x1]  ;;  %v1452_v61 = vor.u32 %v1451_v12, %v1448_v47  ;;  %v1748_v62 = vor.u32 %v1747_v50, %v1744_v49  ;;  %v1418_v63 = vshrl.u32 %v1377_v56, 16  ;;  %v1991_v1 = vld [vmem:[#allocation3 + $0x10] sm:$0xf] }
 0x1ec   : > { %v1421_v0 = vshll.u32 %v1377_v56, 16  ;;  %v1948_v3 = vld [vmem:[#allocation3 + $0x40] sm:$0xf]  ;;  %v1600_v4 = vsel %vm3241_vm9, %v2669_v54, %v1599_v55  ;;  %v2043_v10 = vrot.slane %v2042_v48, 4  ;;  %v1455_v5 = vshll.u32 %v1382_v58, 16  ;;  %v2800_v23 = vld [vmem:[%s3697_s3 + $0x30] sm:$0xff]  }
 0x1ed   : > { %1811 = vrot.lane.b32.xlu0 %v1712_v39, %s2841_s21  ;;  %v2047_v7 = vrot.slane %v2045_v57, 5  ;;  %v1751_v8 = vshll.u32 %v1690_v59, 16  ;;  %v1714_v9 = vshrl.u32 %v1685_v60, 16  ;;  %v1717_v14 = vshll.u32 %v1685_v60, 16  ;;  %v1378_v16 = vld [vmem:[#allocation3 + $0x14] sm:$0x1]  ;;  %2759 = vmatpush1.bf16.msra.mxu1 %v2800_v23 }
 0x1ee   : > { %1964 = vrot.lane.b32.xlu1 %v1945_v40, %s2838_s14  ;;  %v1686_v11 = vld [vmem:[#allocation3 + $0x14] sm:$0x1]  ;;  %v2008_v17 = vshrl.u32 %v1991_v1, 16  ;;  %v2011_v18 = vshll.u32 %v1991_v1, 16  ;;  %v1453_v19 = vrot.slane %v1452_v61, 4  ;;  %v1749_v20 = vrot.slane %v1748_v62, 4  ;;  %2426 = vmatpush1.bf16.msra.mxu0 %v2800_v23 }
 0x1ef   : > { %v1420_v21 = vrot.slane %v1418_v63, 4  ;;  %v1423_v22 = vrot.slane %v1421_v0, 5  ;;  %v2048_v24 = vsel %vm2908_vm2, %v2043_v10, %v2047_v7  ;;  %v1641_v25 = vld [vmem:[#allocation3 + $0x40] sm:$0xf]  ;;  %v1852_v26 = vld [vmem:[#allocation3 + $0x28] sm:$0xe]  ;;  %2750 = vmatprep.subr.bf16.mxu1 %v2837_v2  ;;  %2427 = vmatprep.subr.bf16.mxu0 %v2837_v2 }
 0x1f0   : > { %v1853_v27 = vld [vmem:[#allocation3 + $0x2c] sm:$0x1]  ;;  %v1544_v28 = vld [vmem:[#allocation3 + $0x28] sm:$0xe]  ;;  %v1716_v30 = vrot.slane %v1714_v9, 4  ;;  %v1719_v32 = vrot.slane %v1717_v14, 5 }
 0x1f1   : > { %1920 = vrot.lane.b32.xlu0 %v1903_v51, %s2840_s20  ;;  %v1545_v29 = vld [vmem:[#allocation3 + $0x2c] sm:$0x1]  ;;  %v1457_v33 = vrot.slane %v1455_v5, 5  ;;  %v1753_v34 = vrot.slane %v1751_v8, 5  ;;  %v1992_v36 = vld [vmem:[#allocation3 + $0x14] sm:$0x1]  ;;  %v1424_v47 = vor.u32 %v1423_v22, %v1420_v21 }
 0x1f2   : > { %1503 = vrot.lane.b32.xlu1 %v1416_v52, %s2832_s28  ;;  %v2010_v13 = vrot.slane %v2008_v17, 4  ;;  %v2013_v37 = vrot.slane %v2011_v18, 5  ;;  %v2674_v38 = vrot.slane %v1852_v26, 9  ;;  %v1894_v35 = vrot.slane %v1853_v27, 5  ;;  %v1364_v6 = vld [vmem:[#allocation3 + $0x38] sm:$0xf] }
 0x1f3   : > { %v1427_v39 = vshll.u32 %v1378_v16, 16  ;;  %v1723_v40 = vshll.u32 %v1686_v11, 16  ;;  %v1458_v41 = vsel %vm2908_vm2, %v1453_v19, %v1457_v33  ;;  %v1754_v42 = vsel %vm2908_vm2, %v1749_v20, %v1753_v34  ;;  %v1695_v45 = vld [vmem:[#allocation3 + $0x38] sm:$0xf]  ;;  %1372 = vst.msk [vmem:[#allocation4 + $0x38] sm:$0xf] %vm1134_vm14, %v1364_v6 }
 0x1f4   : > { %v2667_v43 = vrot.slane %v1544_v28, 9  ;;  %v1591_v44 = vrot.slane %v1545_v29, 5  ;;  %v1362_v46 = vld [vmem:[#allocation3 + $0x28] sm:$0xf]  ;;  %v1720_v48 = vor.u32 %v1719_v32, %v1716_v30  ;;  %v2017_v12 = vshll.u32 %v1992_v36, 16  ;;  %v2802_v23 = vld [vmem:[%s3697_s3 + $0x20] sm:$0xff]  }
 0x1f5   : > { %1970 = vrot.lane.b32.xlu0 %v1948_v3, %s2838_s14  ;;  %1370 = vst.msk [vmem:[#allocation4 + $0x28] sm:$0xf] %vm1134_vm14, %v1362_v46  ;;  %v1363_v49 = vld [vmem:[#allocation3 + $0x30] sm:$0xf]  ;;  %v2014_v50 = vor.u32 %v2013_v37, %v2010_v13  ;;  %v3433_v51 = vld [vmem:[#allocation3 + $0x48] sm:$0xf]  ;;  %v1895_v57 = vsel %vm3241_vm9, %v2674_v38, %v1894_v35 }
 0x1f6   : > { %1615 = vrot.lane.b32.xlu1 %v1600_v4, %s2836_s7  ;;  %1371 = vst.msk [vmem:[#allocation4 + $0x30] sm:$0xf] %vm1134_vm14, %v1363_v49  ;;  %v3436_v52 = vrot.slane %v1427_v39, 5  ;;  %v1784_v54 = vshrl.u32 %v1695_v45, 16  ;;  %v2164_v55 = vld [vmem:[#allocation3 + $0x40] sm:$0xe]  ;;  %v1592_v58 = vsel %vm3241_vm9, %v2667_v43, %v1591_v44 }
 0x1f7   : > { %v2165_v56 = vld [vmem:[#allocation3 + $0x44] sm:$0x1]  ;;  %v1725_v59 = vrot.slane %v1723_v40, 5  ;;  %v3442_v60 = vld [vmem:[#allocation3 + $0x40] sm:$0xe]  ;;  %v1787_v61 = vshll.u32 %v1695_v45, 16 }
 0x1f8   : > { %v2001_v62 = vld [vmem:[#allocation3 + $0x38] sm:$0xf]  ;;  %v1425_v63 = vrot.slane %v1424_v47, 4  ;;  %v1721_v0 = vrot.slane %v1720_v48, 4  ;;  %v3446_v1 = vrot.slane %v2017_v12, 5  ;;  %v2106_v4 = vshrl.u32 %v3433_v51, 16 }
 0x1f9   : > { %2123 = vrot.lane.b32.xlu0 %v2048_v24, %s2842_s22  ;;  %v1691_v3 = vld [vmem:[#allocation3 + $0x28] sm:$0xf]  ;;  %v1946_v10 = vld [vmem:[#allocation3 + $0x30] sm:$0xf]  ;;  %v3449_v5 = vrot.slane %v2014_v50, 4  ;;  %v2684_v9 = vrot.slane %v2164_v55, 9 }
 0x1fa   : > { %1664 = vrot.lane.b32.xlu1 %v1641_v25, %s2839_s17  ;;  %v1387_v7 = vld [vmem:[#allocation3 + $0x38] sm:$0xf]  ;;  %v2801_v8 = vld [vmem:[%s3697_s3 + $0x28] sm:$0xff]   ;;  %v2210_v14 = vrot.slane %v2165_v56, 5  ;;  %v1639_v15 = vld [vmem:[#allocation3 + $0x30] sm:$0xf]  ;;  %v1430_v29 = vsel %vm2908_vm2, %v1425_v63, %v3436_v52  ;;  %v1726_v34 = vsel %vm2908_vm2, %v1721_v0, %v1725_v59 }
 0x1fb   : > { %v2677_v16 = vrot.slane %v3442_v60, 9  ;;  %v1786_v11 = vrot.slane %v1784_v54, 4  ;;  %v2078_v17 = vshrl.u32 %v2001_v62, 16  ;;  %v2081_v18 = vshll.u32 %v2001_v62, 16  ;;  %v1859_v19 = vld [vmem:[#allocation3 + $0x44] sm:$0x1]  ;;  %2760 = vmatpush1.bf16.msra.mxu1 %v2801_v8  ;;  %2428 = vmatpush1.bf16.msra.mxu0 %v2801_v8 }
 0x1fc   : > { %v1789_v20 = vrot.slane %v1787_v61, 5  ;;  %v1756_v21 = vshrl.u32 %v1691_v3, 16  ;;  %v1759_v22 = vshll.u32 %v1691_v3, 16  ;;  %v2211_v24 = vsel %vm3241_vm9, %v2684_v9, %v2210_v14  ;;  %v3462_v25 = vld [vmem:[#allocation3 + $0x30] sm:$0xe]  ;;  %2751 = vmatprep.subr.bf16.mxu1 %v2837_v2  ;;  %2429 = vmatprep.subr.bf16.mxu0 %v2837_v2  ;;  %v2803_v43 = vld [vmem:[%s3697_s3 + $0x18] sm:$0xff]  }
 0x1fd   : > { %1509 = vrot.lane.b32.xlu0 %v1458_v41, %s2832_s28  ;;  %v3464_v26 = vld [vmem:[#allocation3 + $0x34] sm:$0x1]  ;;  %v1488_v27 = vshrl.u32 %v1387_v7, 16  ;;  %v1491_v28 = vshll.u32 %v1387_v7, 16  ;;  %2230 = vst.msk [vmem:[#allocation4 + $0x34] sm:$0xf] %vm1134_vm14, %v2211_v24  ;;  %v2020_v36 = vsel %vm2908_vm2, %v3449_v5, %v3446_v1 }
 0x1fe   : > { %1817 = vrot.lane.b32.xlu1 %v1754_v42, %s2841_s21  ;;  %v3470_v30 = vld [vmem:[#allocation3 + $0x30] sm:$0xe]  ;;  %v3472_v32 = vld [vmem:[#allocation3 + $0x34] sm:$0x1]  ;;  %v2003_v33 = vld [vmem:[#allocation3 + $0x40] sm:$0xf]  ;;  %v1790_v39 = vor.u32 %v1789_v20, %v1786_v11 }
 0x1ff   : > { %v1906_v13 = vrot.slane %v1859_v19, 5  ;;  %v1696_v37 = vld [vmem:[#allocation3 + $0x3c] sm:$0x1]  ;;  %v2080_v38 = vrot.slane %v2078_v17, 4  ;;  %v1997_v35 = vld [vmem:[#allocation3 + $0x28] sm:$0xf]  ;;  %2761 = vmatpush1.bf16.msra.mxu1 %v2802_v23  ;;  %2430 = vmatpush1.bf16.msra.mxu0 %v2802_v23 }
 0x200   : > { %v2002_v40 = vld [vmem:[#allocation3 + $0x3c] sm:$0x1]  ;;  %v2083_v6 = vrot.slane %v2081_v18, 5  ;;  %v1758_v41 = vrot.slane %v1756_v21, 4  ;;  %v1761_v42 = vrot.slane %v1759_v22, 5  ;;  %v1490_v45 = vrot.slane %v1488_v27, 4  ;;  %2752 = vmatprep.subr.bf16.mxu1 %v2837_v2  ;;  %2431 = vmatprep.subr.bf16.mxu0 %v2837_v2 }
 0x201   : > { %1916 = vrot.lane.b32.xlu0 %v1895_v57, %s2840_s20  ;;  %v1692_v44 = vld [vmem:[#allocation3 + $0x2c] sm:$0x1]  ;;  %v1493_v46 = vrot.slane %v1491_v28, 5  ;;  %v2092_v47 = vshrl.u32 %v2003_v33, 16  ;;  %v2095_v48 = vshll.u32 %v2003_v33, 16  ;;  %v2668_v12 = vrot.slane %v3462_v25, 9 }
 0x202   : > { %1611 = vrot.lane.b32.xlu1 %v1592_v58, %s2836_s7  ;;  %v1595_v49 = vrot.slane %v3464_v26, 5  ;;  %v2050_v50 = vshrl.u32 %v1997_v35, 16  ;;  %v2053_v52 = vshll.u32 %v1997_v35, 16  ;;  %v1907_v54 = vsel %vm3241_vm9, %v2677_v16, %v1906_v13  ;;  %v1999_v58 = vld [vmem:[#allocation3 + $0x30] sm:$0xf]  ;;  %v2805_v25 = vld [vmem:[%s3697_s3 + $0x8] sm:$0xff]  }
 0x203   : > { %v2675_v55 = vrot.slane %v3470_v30, 9  ;;  %v1898_v56 = vrot.slane %v3472_v32, 5  ;;  %v1793_v57 = vshll.u32 %v1696_v37, 16  ;;  %v1791_v59 = vrot.slane %v1790_v39, 4  ;;  %v1383_v63 = vld [vmem:[#allocation3 + $0x28] sm:$0xf]  ;;  %2762 = vmatpush1.bf16.msra.mxu1 %v2803_v43  ;;  %2432 = vmatpush1.bf16.msra.mxu0 %v2803_v43 }
 0x204   : > { %v2084_v60 = vor.u32 %v2083_v6, %v2080_v38  ;;  %v2087_v61 = vshll.u32 %v2002_v40, 16  ;;  %v1765_v62 = vshll.u32 %v1692_v44, 16  ;;  %v2804_v0 = vld [vmem:[%s3697_s3 + $0x10] sm:$0xff]   ;;  %v1762_v1 = vor.u32 %v1761_v42, %v1758_v41  ;;  %v1388_v3 = vld [vmem:[#allocation3 + $0x3c] sm:$0x1]  ;;  %2753 = vmatprep.subr.bf16.mxu1 %v2837_v2  ;;  %2433 = vmatprep.subr.bf16.mxu0 %v2837_v2 }
 0x205   : > { %1966 = vrot.lane.b32.xlu0 %v1946_v10, %s2838_s14  ;;  %v1494_v10 = vor.u32 %v1493_v46, %v1490_v45  ;;  %v2094_v5 = vrot.slane %v2092_v47, 4  ;;  %v2097_v7 = vrot.slane %v2095_v48, 5  ;;  %v2052_v8 = vrot.slane %v2050_v50, 4  ;;  %v1385_v24 = vld [vmem:[#allocation3 + $0x30] sm:$0xf]  ;;  %v2806_v45 = vld [vmem:[%s3697_s3] sm:$0xff]  }
 0x206   : > { %1660 = vrot.lane.b32.xlu1 %v1639_v15, %s2839_s17  ;;  %v2055_v9 = vrot.slane %v2053_v52, 5  ;;  %v2064_v14 = vshrl.u32 %v1999_v58, 16  ;;  %v2067_v15 = vshll.u32 %v1999_v58, 16  ;;  %v1596_v11 = vsel %vm3241_vm9, %v2668_v12, %v1595_v49  ;;  %v1697_v30 = vld [vmem:[#allocation3 + $0x40] sm:$0xf] }
 0x207   : > { %v1795_v17 = vrot.slane %v1793_v57, 5  ;;  %v1460_v18 = vshrl.u32 %v1383_v63, 16  ;;  %v1463_v19 = vshll.u32 %v1383_v63, 16  ;;  %v1899_v20 = vsel %vm3241_vm9, %v2675_v55, %v1898_v56  ;;  %2763 = vmatpush1.bf16.msra.mxu1 %v2804_v0  ;;  %2434 = vmatpush1.bf16.msra.mxu0 %v2804_v0  ;;  %v2004_v32 = vld [vmem:[#allocation3 + $0x44] sm:$0x1] }
 0x208   : > { %v2085_v21 = vrot.slane %v2084_v60, 4  ;;  %v2089_v22 = vrot.slane %v2087_v61, 5  ;;  %v1497_v23 = vshll.u32 %v1388_v3, 16  ;;  %v1763_v27 = vrot.slane %v1762_v1, 4  ;;  %2754 = vmatprep.subr.bf16.mxu1 %v2837_v2  ;;  %2435 = vmatprep.subr.bf16.mxu0 %v2837_v2  ;;  %v2000_v48 = vld [vmem:[#allocation3 + $0x34] sm:$0x1] }
 0x209   : > { %1505 = vrot.lane.b32.xlu0 %v1430_v29, %s2832_s28  ;;  %v1796_v26 = vsel %vm2908_vm2, %v1791_v59, %v1795_v17  ;;  %v1767_v28 = vrot.slane %v1765_v62, 5  ;;  %v1495_v29 = vrot.slane %v1494_v10, 4  ;;  %v2098_v33 = vor.u32 %v2097_v7, %v2094_v5  ;;  %v1693_v12 = vld [vmem:[#allocation3 + $0x30] sm:$0xf]  ;;  %v1384_v57 = vld [vmem:[#allocation3 + $0x2c] sm:$0x1] }
 0x20a   : > { %1813 = vrot.lane.b32.xlu1 %v1726_v34, %s2841_s21  ;;  %v1998_v34 = vld [vmem:[#allocation3 + $0x2c] sm:$0x1]  ;;  %v2066_v13 = vrot.slane %v2064_v14, 4  ;;  %v2069_v37 = vrot.slane %v2067_v15, 5  ;;  %v1462_v35 = vrot.slane %v1460_v18, 4  ;;  %v1465_v39 = vrot.slane %v1463_v19, 5 }
 0x20b   : > { %v1474_v40 = vshrl.u32 %v1385_v24, 16  ;;  %v1477_v6 = vshll.u32 %v1385_v24, 16  ;;  %v2090_v41 = vsel %vm2908_vm2, %v2085_v21, %v2089_v22  ;;  %v1499_v42 = vrot.slane %v1497_v23, 5  ;;  %2764 = vmatpush1.bf16.msra.mxu1 %v2805_v25  ;;  %2436 = vmatpush1.bf16.msra.mxu0 %v2805_v25  ;;  %v2807_v55 = vld [vmem:[%s3697_s3 + $0x48] ss:$0 sps:$4 sm:$0x33]  }
 0x20c   : > { %v1798_v43 = vshrl.u32 %v1697_v30, 16  ;;  %v1801_v44 = vshll.u32 %v1697_v30, 16  ;;  %v2101_v46 = vshll.u32 %v2004_v32, 16  ;;  %v2059_v47 = vshll.u32 %v1998_v34, 16  ;;  %2755 = vmatprep.subr.bf16.mxu1 %v2837_v2  ;;  %2437 = vmatprep.subr.bf16.mxu0 %v2837_v2  ;;  %v1386_v17 = vld [vmem:[#allocation3 + $0x34] sm:$0x1] }
 0x20d   : > { %2119 = vrot.lane.b32.xlu0 %v2020_v36, %s2842_s22  ;;  %v2056_v36 = vor.u32 %v2055_v9, %v2052_v8  ;;  %v1768_v49 = vsel %vm2908_vm2, %v1763_v27, %v1767_v28  ;;  %v1500_v50 = vsel %vm2908_vm2, %v1495_v29, %v1499_v42  ;;  %v2099_v52 = vrot.slane %v2098_v33, 4  ;;  %v1698_v18 = vld [vmem:[#allocation3 + $0x44] sm:$0x1]  ;;  %v2006_v24 = vld [vmem:[#allocation3 + $0x4c] sm:$0x1] }
 0x20e   : > { %1922 = vrot.lane.b32.xlu1 %v1907_v54, %s2840_s20  ;;  %v2070_v56 = vor.u32 %v2069_v37, %v2066_v13  ;;  %v1466_v58 = vor.u32 %v1465_v39, %v1462_v35  ;;  %v1476_v59 = vrot.slane %v1474_v40, 4  ;;  %v1479_v60 = vrot.slane %v1477_v6, 5  ;;  %v2808_v30 = vld [vmem:[%s3697_s3 + $0x40] sm:$0xff]   ;;  %v1694_v33 = vld [vmem:[#allocation3 + $0x34] sm:$0x1] }
 0x20f   : > { %v2057_v54 = vrot.slane %v2056_v36, 4  ;;  %v1800_v61 = vrot.slane %v1798_v43, 4  ;;  %v1803_v62 = vrot.slane %v1801_v44, 5  ;;  %v1770_v63 = vshrl.u32 %v1693_v12, 16  ;;  %2765 = vmatpush1.bf16.msra.mxu1 %v2806_v45  ;;  %2438 = vmatpush1.bf16.msra.mxu0 %v2806_v45  ;;  %v2167_v42 = vld [vmem:[#allocation3 + $0x4c] sm:$0x1] }
 0x210   : > { %v3502_v16 = vpop.permute.xlu0 %1654  ;;  %v1773_v0 = vshll.u32 %v1693_v12, 16  ;;  %v2103_v1 = vrot.slane %v2101_v46, 5  ;;  %v2061_v3 = vrot.slane %v2059_v47, 5  ;;  %v2073_v10 = vshll.u32 %v2000_v48, 16  ;;  %2756 = vmatprep.subr.bf16.mxu1 %v2837_v2  ;;  %2451 = vmatprep.subr.bf16.mxu0 %v2837_v2  ;;  %v2686_v45 = vld [vmem:[%s2886_s24 + $0xd8] sm:$0xf]  ;;  %v3566_v12 = vpop.permute.xlu1 %1972 }
 0x211   : > { %1613 = vrot.lane.b32.xlu0 %v1596_v11, %s2836_s7  ;;  %v2421_v5 = vsel %vm1053_vm4, %v2807_v55, 0  ;;  %v1469_v7 = vshll.u32 %v1384_v57, 16  ;;  %v2109_v8 = vshll.u32 %v3433_v51, 16  ;;  %v2071_v15 = vrot.slane %v2070_v56, 4  ;;  %v2693_v56 = vld [vmem:[%s2886_s24 + $0x110] sm:$0xf] }
 0x212   : > { %1918 = vrot.lane.b32.xlu1 %v1899_v20, %s2840_s20  ;;  %v2104_v9 = vsel %vm2908_vm2, %v2099_v52, %v2103_v1  ;;  %v2062_v14 = vsel %vm2908_vm2, %v2057_v54, %v2061_v3  ;;  %v1467_v11 = vrot.slane %v1466_v58, 4  ;;  %v1480_v19 = vor.u32 %v1479_v60, %v1476_v59  ;;  %v2692_v52 = vld [vmem:[%s2886_s24 + $0x108] sm:$0xf]  ;;  %s2568_s24 = sshll.u32 %s2561_s19, 3 }
 0x213   : > { %v1804_v20 = vor.u32 %v1803_v62, %v1800_v61  ;;  %v1772_v21 = vrot.slane %v1770_v63, 4  ;;  %v1775_v22 = vrot.slane %v1773_v0, 5  ;;  %2766 = vmatpush2.bf16.msra.mxu1 %v2421_v5  ;;  %2452 = vmatpush2.bf16.msra.mxu0 %v2421_v5  ;;  %v2075_v23 = vrot.slane %v2073_v10, 5  ;;  %p226_p4 = scmp.lt.s32.totalorder %s2568_s24, 15 }
 0x214   : > { %v1651_v38 = vpop.permute.xlu0 %1650  ;;  %v2108_v25 = vrot.slane %v2106_v4, 4  ;;  %v1483_v27 = vshll.u32 %v1386_v17, 16  ;;  %v1807_v28 = vshll.u32 %v1698_v18, 16  ;;  %v2111_v29 = vrot.slane %v2109_v8, 5  ;;  %2757 = vmatprep.subr.bf16.mxu1 %v2837_v2  ;;  %2453 = vmatprep.subr.bf16.mxu0 %v2837_v2  ;;  %v3578_v55 = vpop.permute.xlu1 %1960 }
 0x215   : > { %1675 = vst.msk [vmem:[#allocation4] sm:$0xf] %vm1674_vm13, %v1651_v38  ;;  %1823 = vrot.lane.b32.xlu0 %v1796_v26, %s2841_s21  ;;  %v1471_v26 = vrot.slane %v1469_v7, 5  ;;  %v2076_v32 = vsel %vm2908_vm2, %v2071_v15, %v2075_v23  ;;  %v1481_v4 = vrot.slane %v1480_v19, 4  ;;  %v1805_v34 = vrot.slane %v1804_v20, 4  ;;  %s3713_s24 = smov (!%p226_p4, %s2568_s24), 15 }
 0x216   : > { %2129 = vrot.lane.b32.xlu1 %v2090_v41, %s2842_s22  ;;  %v1776_v36 = vor.u32 %v1775_v22, %v1772_v21  ;;  %v2115_v13 = vshll.u32 %v2006_v24, 16  ;;  %v1485_v37 = vrot.slane %v1483_v27, 5  ;;  %v1809_v2 = vrot.slane %v1807_v28, 5  ;;  %v2166_v41 = vld [vmem:[#allocation3 + $0x48] sm:$0xe] }
 0x217   : > { %v1472_v51 = vsel %vm2908_vm2, %v1467_v11, %v1471_v26  ;;  %2767 = vmatpush2.bf16.msra.mxu1 %v2808_v30  ;;  %2454 = vmatpush2.bf16.msra.mxu0 %v2808_v30  ;;  %v1779_v38 = vshll.u32 %v1694_v33, 16  ;;  %v2112_v35 = vor.u32 %v2111_v29, %v2108_v25  ;;  %v2685_v43 = vrot.slane %v2166_v41, 9 }
 0x218   : > { %v1486_v39 = vsel %vm2908_vm2, %v1481_v4, %v1485_v37  ;;  %v1810_v40 = vsel %vm2908_vm2, %v1805_v34, %v1809_v2  ;;  %v1777_v6 = vrot.slane %v1776_v36, 4  ;;  %v2214_v44 = vrot.slane %v2167_v42, 5  ;;  %v1608_v57 = vpop.permute.xlu1 %1607  ;;  %v3585_v58 = vpop.permute.xlu0 %1912  ;;  %v2811_v42 = vld [vmem:[#allocation4 + $0x14] ss:$8 sps:$4 sm:$0xff]  }
 0x219   : > { %1819 = vrot.lane.b32.xlu0 %v1768_v49, %s2841_s21  ;;  %v1781_v46 = vrot.slane %v1779_v38, 5  ;;  %v2113_v47 = vrot.slane %v2112_v35, 4  ;;  %v2117_v48 = vrot.slane %v2115_v13, 5  ;;  %vm1932_vm4 = vcmask 781952   ;;  %2714 = vmatprep.mubr.msk.bf16.mxu1 %vm2407_vm0, %v2811_v42 }
 0x21a   : > { %1515 = vrot.lane.b32.xlu1 %v1500_v50, %s2832_s28  ;;  %v2215_v49 = vsel %vm3241_vm9, %v2685_v43, %v2214_v44 }
 0x21b   : > { %v1782_v50 = vsel %vm2908_vm2, %v1777_v6, %v1781_v46  ;;  %2231 = vst.msk [vmem:[#allocation4 + $0x3c] sm:$0xf] %vm1134_vm14, %v2215_v49  ;;  %v2118_v54 = vsel %vm2908_vm2, %v2113_v47, %v2117_v48  ;;  %vm1835_vm2 = vcmask 650752   ;;  %vm1982_vm14 = vcmask 913152   ;;  %v2812_v48 = vld [vmem:[#allocation4 + $0x24] ss:$8 sps:$4 sm:$0xff]  }
 0x21c   : > { %v1657_v59 = vpop.permute.xlu1 %1656  ;;  %v1963_v60 = vpop.permute.xlu0 %1962 }
 0x21d   : > { %2131 = vrot.lane.b32.xlu0 %v2104_v9, %s2842_s22 }
 0x21e   : > { %2125 = vrot.lane.b32.xlu1 %v2062_v14, %s2842_s22 }
 0x220   : > { %v1604_v61 = vpop.permute.xlu1 %1603  ;;  %v1909_v31 = vpop.permute.xlu0 %1908 }
 0x221   : > { %2127 = vrot.lane.b32.xlu0 %v2076_v32, %s2842_s22 }
 0x222   : > { %1511 = vrot.lane.b32.xlu1 %v1472_v51, %s2832_s28 }
 0x224   : > { %v1653_v62 = vpop.permute.xlu1 %1652  ;;  %v1959_v63 = vpop.permute.xlu0 %1958 }
 0x225   : > { %1513 = vrot.lane.b32.xlu0 %v1486_v39, %s2832_s28 }
 0x226   : > { %1825 = vrot.lane.b32.xlu1 %v1810_v40, %s2841_s21 }
 0x228   : > { %v1915_v0 = vpop.permute.xlu1 %1914  ;;  %v1610_v1 = vpop.permute.xlu0 %1609 }
 0x229   : > { %2248 = vrot.lane.b32.xlu0 %v2686_v45, %s2832_s28 }
 0x22a   : > { %1821 = vrot.lane.b32.xlu1 %v1782_v50, %s2841_s21 }
 0x22d   : > { %2260 = vrot.lane.b32.xlu0 %v2692_v52, %s2832_s28 }
 0x22e   : > { %2133 = vrot.lane.b32.xlu1 %v2118_v54, %s2842_s22  ;;  %s2569_s22 = sshll.u32 %s3713_s24, 3 }
 0x22f   : > { %s3673_s27 = scalar_lea.vmem %s3699_s5, %s2569_s22 }
 0x232   : > { %2250 = vrot.lane.b32.xlu1 %v2687_v53, %s2832_s28  ;;  %v2694_v53 = vld [vmem:[%s3698_s4] ss:$0 sm:$0xff] }
 0x236   : > { %2262 = vrot.lane.b32.xlu1 %v2693_v56, %s2832_s28 }
 0x24f   : > { %v3588_v3 = vpop.permute.xlu0 %1662 }
 0x250   : > { %v3590_v10 = vpop.permute.xlu1 %1968 }
 0x253   : > { %v1606_v5 = vpop.permute.xlu0 %1605 }
 0x254   : > { %v1508_v7 = vpop.permute.xlu1 %1507 }
 0x255   : > { %1529 = vst.msk [vmem:[#allocation4 + $0x18] sm:$0xf] %vm1525_vm10, %v1508_v7 }
 0x256   : > { %1629 = vst.msk [vmem:[#allocation4 + $0x18] sm:$0xf] %vm1625_vm11, %v1608_v57 }
 0x257   : > { %1678 = vst.msk [vmem:[#allocation4 + $0x18] sm:$0xf] %vm1674_vm13, %v1657_v59  ;;  %v1816_v8 = vpop.permute.xlu0 %1815 }
 0x258   : > { %v1911_v9 = vpop.permute.xlu1 %1910 }
 0x25b   : > { %v1659_v14 = vpop.permute.xlu0 %1658 }
 0x25c   : > { %v2122_v15 = vpop.permute.xlu1 %2121 }
 0x25f   : > { %v1812_v11 = vpop.permute.xlu0 %1811 }
 0x260   : > { %v1965_v17 = vpop.permute.xlu1 %1964  ;;  %1836 = vst.msk [vmem:[#allocation4] sm:$0xf] %vm1835_vm2, %v1812_v11 }
 0x261   : > { %1933 = vst.msk [vmem:[#allocation4] sm:$0xf] %vm1932_vm4, %v1909_v31 }
 0x262   : > { %1983 = vst.msk [vmem:[#allocation4] sm:$0xf] %vm1982_vm14, %v1959_v63 }
 0x263   : > { %v3598_v18 = vpop.permute.xlu0 %1920 }
 0x264   : > { %v1504_v19 = vpop.permute.xlu1 %1503 }
 0x265   : > { %1527 = vst.msk [vmem:[#allocation4 + $0x8] sm:$0xf] %vm1525_vm10, %v1504_v19 }
 0x266   : > { %1627 = vst.msk [vmem:[#allocation4 + $0x8] sm:$0xf] %vm1625_vm11, %v1604_v61 }
 0x267   : > { %1676 = vst.msk [vmem:[#allocation4 + $0x8] sm:$0xf] %vm1674_vm13, %v1653_v62  ;;  %v3603_v20 = vpop.permute.xlu0 %1970 }
 0x268   : > { %v1616_v21 = vpop.permute.xlu1 %1615 }
 0x26b   : > { %v2124_v22 = vpop.permute.xlu0 %2123 }
 0x26c   : > { %v1665_v23 = vpop.permute.xlu1 %1664 }
 0x26f   : > { %v1510_v24 = vpop.permute.xlu0 %1509 }
 0x270   : > { %v1818_v25 = vpop.permute.xlu1 %1817  ;;  %1530 = vst.msk [vmem:[#allocation4 + $0x20] sm:$0xf] %vm1525_vm10, %v1510_v24 }
 0x271   : > { %1839 = vst.msk [vmem:[#allocation4 + $0x18] sm:$0xf] %vm1835_vm2, %v1818_v25 }
 0x272   : > { %1630 = vst.msk [vmem:[#allocation4 + $0x20] sm:$0xf] %vm1625_vm11, %v1610_v1 }
 0x273   : > { %1936 = vst.msk [vmem:[#allocation4 + $0x18] sm:$0xf] %vm1932_vm4, %v1915_v0  ;;  %v1917_v26 = vpop.permute.xlu0 %1916 }
 0x274   : > { %1679 = vst.msk [vmem:[#allocation4 + $0x20] sm:$0xf] %vm1674_vm13, %v1659_v14  ;;  %v1612_v27 = vpop.permute.xlu1 %1611 }
 0x275   : > { %1986 = vst.msk [vmem:[#allocation4 + $0x18] sm:$0xf] %vm1982_vm14, %v1965_v17 }
 0x277   : > { %v1967_v28 = vpop.permute.xlu0 %1966 }
 0x278   : > { %v1661_v29 = vpop.permute.xlu1 %1660 }
 0x27b   : > { %v1506_v30 = vpop.permute.xlu0 %1505 }
 0x27c   : > { %v1814_v32 = vpop.permute.xlu1 %1813  ;;  %1528 = vst.msk [vmem:[#allocation4 + $0x10] sm:$0xf] %vm1525_vm10, %v1506_v30 }
 0x27d   : > { %1837 = vst.msk [vmem:[#allocation4 + $0x8] sm:$0xf] %vm1835_vm2, %v1814_v32 }
 0x27e   : > { %1628 = vst.msk [vmem:[#allocation4 + $0x10] sm:$0xf] %vm1625_vm11, %v1606_v5 }
 0x27f   : > { %1934 = vst.msk [vmem:[#allocation4 + $0x8] sm:$0xf] %vm1932_vm4, %v1911_v9  ;;  %v2120_v33 = vpop.permute.xlu0 %2119 }
 0x280   : > { %1677 = vst.msk [vmem:[#allocation4 + $0x10] sm:$0xf] %vm1674_vm13, %v3502_v16  ;;  %v1923_v51 = vpop.permute.xlu1 %1922 }
 0x281   : > { %1984 = vst.msk [vmem:[#allocation4 + $0x8] sm:$0xf] %vm1982_vm14, %v3578_v55 }
 0x282   : > { %1838 = vst.msk [vmem:[#allocation4 + $0x10] sm:$0xf] %vm1835_vm2, %v1816_v8 }
 0x283   : > { %2145 = vst.msk [vmem:[#allocation4 + $0x8] sm:$0xf] %vm2143_vm15, %v2122_v15  ;;  %2144 = vst.msk [vmem:[#allocation4] sm:$0xf] %vm2143_vm15, %v2120_v33  ;;  %v1614_v4 = vpop.permute.xlu0 %1613 }
 0x284   : > { %1935 = vst.msk [vmem:[#allocation4 + $0x10] sm:$0xf] %vm1932_vm4, %v3585_v58  ;;  %v1919_v16 = vpop.permute.xlu1 %1918 }
 0x285   : > { %1985 = vst.msk [vmem:[#allocation4 + $0x10] sm:$0xf] %vm1982_vm14, %v1963_v60 }
 0x286   : > { %2146 = vst.msk [vmem:[#allocation4 + $0x10] sm:$0xf] %vm2143_vm15, %v2124_v22 }
 0x287   : > { %v1824_v34 = vpop.permute.xlu0 %1823 }
 0x288   : > { %v2130_v36 = vpop.permute.xlu1 %2129 }
 0x28a   : > { %v2815_v50 = vld [vmem:[#allocation4] ss:$8 sps:$4 sm:$0xff]  }
 0x28b   : > { %v1820_v13 = vpop.permute.xlu0 %1819 }
 0x28c   : > { %v1516_v37 = vpop.permute.xlu1 %1515  ;;  %1840 = vst.msk [vmem:[#allocation4 + $0x20] sm:$0xf] %vm1835_vm2, %v1820_v13 }
 0x28d   : > { %1533 = vst.msk [vmem:[#allocation4 + $0x38] sm:$0xf] %vm1525_vm10, %v1516_v37 }
 0x28e   : > { %1937 = vst.msk [vmem:[#allocation4 + $0x20] sm:$0xf] %vm1932_vm4, %v1917_v26 }
 0x28f   : > { %1633 = vst.msk [vmem:[#allocation4 + $0x38] sm:$0xf] %vm1625_vm11, %v1616_v21  ;;  %v2132_v2 = vpop.permute.xlu0 %2131 }
 0x290   : > { %1987 = vst.msk [vmem:[#allocation4 + $0x20] sm:$0xf] %vm1982_vm14, %v1967_v28  ;;  %v2126_v38 = vpop.permute.xlu1 %2125 }
 0x291   : > { %1682 = vst.msk [vmem:[#allocation4 + $0x38] sm:$0xf] %vm1674_vm13, %v1665_v23 }
 0x292   : > { %2147 = vst.msk [vmem:[#allocation4 + $0x18] sm:$0xf] %vm2143_vm15, %v2126_v38 }
 0x293   : > { %v2128_v35 = vpop.permute.xlu0 %2127 }
 0x294   : > { %v1512_v39 = vpop.permute.xlu1 %1511  ;;  %2148 = vst.msk [vmem:[#allocation4 + $0x20] sm:$0xf] %vm2143_vm15, %v2128_v35 }
 0x295   : > { %1531 = vst.msk [vmem:[#allocation4 + $0x28] sm:$0xf] %vm1525_vm10, %v1512_v39 }
 0x296   : > { %1631 = vst.msk [vmem:[#allocation4 + $0x28] sm:$0xf] %vm1625_vm11, %v1612_v27 }
 0x297   : > { %1680 = vst.msk [vmem:[#allocation4 + $0x28] sm:$0xf] %vm1674_vm13, %v1661_v29  ;;  %v1514_v40 = vpop.permute.xlu0 %1513 }
 0x298   : > { %v1826_v6 = vpop.permute.xlu1 %1825  ;;  %1532 = vst.msk [vmem:[#allocation4 + $0x30] sm:$0xf] %vm1525_vm10, %v1514_v40 }
 0x299   : > { %v2809_v41 = vld [vmem:[#allocation4 + $0x10] ss:$8 sps:$4 sm:$0xff]   ;;  %1843 = vst.msk [vmem:[#allocation4 + $0x38] sm:$0xf] %vm1835_vm2, %v1826_v6 }
 0x29a   : > { %1632 = vst.msk [vmem:[#allocation4 + $0x30] sm:$0xf] %vm1625_vm11, %v1614_v4  ;;  %2464 = vmatmul.mubr.bf16.vlgmr.msra.gmra.mxu1 %v2809_v41 }
 0x29b   : > { %1940 = vst.msk [vmem:[#allocation4 + $0x38] sm:$0xf] %vm1932_vm4, %v1923_v51  ;;  %v2249_v43 = vpop.permute.xlu0 %2248  ;;  %2715 = vmatprep.mubr.msk.bf16.mxu1 %vm2407_vm0, %v2812_v48 }
 0x29c   : > { %1681 = vst.msk [vmem:[#allocation4 + $0x30] sm:$0xf] %vm1674_vm13, %v3588_v3  ;;  %v1822_v44 = vpop.permute.xlu1 %1821 }
 0x29d   : > { %1990 = vst.msk [vmem:[#allocation4 + $0x38] sm:$0xf] %vm1982_vm14, %v3566_v12 }
 0x29e   : > { %1842 = vst.msk [vmem:[#allocation4 + $0x30] sm:$0xf] %vm1835_vm2, %v1824_v34  ;;  %1841 = vst.msk [vmem:[#allocation4 + $0x28] sm:$0xf] %vm1835_vm2, %v1822_v44 }
 0x29f   : > { %1939 = vst.msk [vmem:[#allocation4 + $0x30] sm:$0xf] %vm1932_vm4, %v3598_v18  ;;  %1938 = vst.msk [vmem:[#allocation4 + $0x28] sm:$0xf] %vm1932_vm4, %v1919_v16  ;;  %v2261_v45 = vpop.permute.xlu0 %2260 }
 0x2a0   : > { %2272 = vst.msk [vmem:[#allocation4 + $0x4] sm:$0xf] %vm554_vm8, %v2249_v43  ;;  %v2134_v46 = vpop.permute.xlu1 %2133  ;;  %2278 = vst.msk [vmem:[#allocation4 + $0x34] sm:$0xf] %vm554_vm8, %v2261_v45 }
 0x2a1   : > { %1989 = vst.msk [vmem:[#allocation4 + $0x30] sm:$0xf] %vm1982_vm14, %v3603_v20  ;;  %1988 = vst.msk [vmem:[#allocation4 + $0x28] sm:$0xf] %vm1982_vm14, %v3590_v10 }
 0x2a2   : > { %2150 = vst.msk [vmem:[#allocation4 + $0x30] sm:$0xf] %vm2143_vm15, %v2132_v2  ;;  %2149 = vst.msk [vmem:[#allocation4 + $0x28] sm:$0xf] %vm2143_vm15, %v2130_v36 }
 0x2a3   : > { %2151 = vst.msk [vmem:[#allocation4 + $0x38] sm:$0xf] %vm2143_vm15, %v2134_v46 }
 0x2a4   : > { %v2251_v47 = vpop.permute.xlu1 %2250 }
 0x2a5   : > { %2273 = vst.msk [vmem:[#allocation4 + $0xc] sm:$0xf] %vm554_vm8, %v2251_v47 }
 0x2a8   : > { %v2263_v49 = vpop.permute.xlu1 %2262 }
 0x2a9   : > { %v2814_v12 = vld [vmem:[#allocation4 + $0x20] ss:$8 sps:$4 sm:$0xff]   ;;  %2279 = vst.msk [vmem:[#allocation4 + $0x3c] sm:$0xf] %vm554_vm8, %v2263_v49  ;;  %vm2496_vm8 = vcmask 130048  }
 0x2aa   : > { %2472 = vmatmul.mubr.bf16.gmra.mxu1 %v2814_v12  ;;  %v2820_v55 = vld [vmem:[#allocation4 + $0x30] ss:$8 sps:$4 sm:$0xff]  }
 0x2ac   : > { %v2817_v52 = vld [vmem:[#allocation4 + $0x4] ss:$8 sps:$4 sm:$0xff]  }
 0x2ad   : > { %2713 = vmatprep.mubr.msk.bf16.mxu0 %vm2407_vm0, %v2817_v52 }
 0x2ae   : > { %2456 = vmatmul.mubr.bf16.vlgmr.msra.gmra.mxu0 %v2815_v50 }
 0x2b0   : > { %v2818_v54 = vld [vmem:[#allocation4 + $0x34] ss:$8 sps:$4 sm:$0xff]  }
 0x2b1   : > { %2716 = vmatprep.mubr.msk.bf16.mxu1 %vm2407_vm0, %v2818_v54 }
 0x2b2   : > { %2480 = vmatmul.mubr.bf16.gmra.mxu1 %v2820_v55 }
 0x35a   : > { %v2465_v56 = vpop.f32.mrf.mxu1 }
 0x35b   : > { %v2466_v57 = vadd.f32 %v2694_v53, %v2465_v56 }
 0x35c   : > { %v2467_v58 = vpop.f32.mrf.mxu1 }
 0x35d   : > { %v2490_v59 = vmax.f32 %v2466_v57, 0.0 }
 0x35e   : > { %v2468_v60 = vpop.f32.mrf.mxu1 }
 0x35f   : > { %2499 = vst.msk [vmem:[%s3673_s27 + $0x10] sm:$0xff] %vm2496_vm8, %v2490_v59  ;;  %v2469_v61 = vadd.f32 %v2694_v53, %v2468_v60 }
 0x360   : > { %v2470_v31 = vpop.f32.mrf.mxu1 }
 0x361   : > { %v2491_v62 = vmax.f32 %v2469_v61, 0.0 }
 0x363   : > { %2500 = vst.msk [vmem:[%s3673_s27 + $0x18] sm:$0xff] %vm2496_vm8, %v2491_v62 }
 0x36a   : > { %v2473_v63 = vpop.f32.mrf.mxu1 }
 0x36b   : > { %v2474_v0 = vadd.f32 %v2694_v53, %v2473_v63 }
 0x36c   : > { %v2475_v1 = vpop.f32.mrf.mxu1 }
 0x36d   : > { %v2492_v3 = vmax.f32 %v2474_v0, 0.0 }
 0x36e   : > { %v2476_v10 = vpop.f32.mrf.mxu1  ;;  %v2457_v7 = vpop.f32.mrf.mxu0 }
 0x36f   : > { %2501 = vst.msk [vmem:[%s3673_s27 + $0x20] sm:$0xff] %vm2496_vm8, %v2492_v3  ;;  %v2477_v5 = vadd.f32 %v2694_v53, %v2476_v10  ;;  %v2458_v8 = vadd.f32 %v2694_v53, %v2457_v7 }
 0x370   : > { %v2478_v9 = vpop.f32.mrf.mxu1  ;;  %v2459_v15 = vpop.f32.mrf.mxu0 }
 0x371   : > { %v2493_v14 = vmax.f32 %v2477_v5, 0.0  ;;  %v2488_v11 = vmax.f32 %v2458_v8, 0.0 }
 0x372   : > { %v2460_v17 = vpop.f32.mrf.mxu0  ;;  %v2481_v18 = vpop.f32.mrf.mxu1 }
 0x373   : > { %2502 = vst.msk [vmem:[%s3673_s27 + $0x28] sm:$0xff] %vm2496_vm8, %v2493_v14  ;;  %2497 = vst.msk [vmem:[%s3673_s27] sm:$0xff] %vm2496_vm8, %v2488_v11  ;;  %v2461_v19 = vadd.f32 %v2694_v53, %v2460_v17  ;;  %v2482_v20 = vadd.f32 %v2694_v53, %v2481_v18 }
 0x374   : > { %v2462_v21 = vpop.f32.mrf.mxu0  ;;  %v2483_v22 = vpop.f32.mrf.mxu1 }
 0x375   : > { %v2489_v23 = vmax.f32 %v2461_v19, 0.0  ;;  %v2494_v24 = vmax.f32 %v2482_v20, 0.0 }
 0x376   : > { %v2484_v25 = vpop.f32.mrf.mxu1 }
 0x377   : > { %2498 = vst.msk [vmem:[%s3673_s27 + $0x8] sm:$0xff] %vm2496_vm8, %v2489_v23  ;;  %2503 = vst.msk [vmem:[%s3673_s27 + $0x30] sm:$0xff] %vm2496_vm8, %v2494_v24  ;;  %v2485_v26 = vadd.f32 %v2694_v53, %v2484_v25 }
 0x378   : > { %v2486_v27 = vpop.f32.mrf.mxu1 }
 0x379   : > { %v2495_v28 = vmax.f32 %v2485_v26, 0.0 }
 0x37b   : > { %2504 = vst.msk [vmem:[%s3673_s27 + $0x38] sm:$0xff] %vm2496_vm8, %v2495_v28 }
 0x37c PF: > { %s15_s18 = sadd.s32 1, %s2827_s18  }
 0x37d   : > { %p12_p5 = scmp.ge.s32.totalorder %s15_s18, 4  }
 0x37f   :  { %14 = sbr.rel (!%p12_p5) target bundleno = 1 (0x1), region = 78 }

</bundles_post_ra>
